<compile_context>
chip_gen: v7x
topology: tpu7x:2x2x1
jax: 0.10.0
libtpu: 0.0.40
codegen_flags: <defaults>
</compile_context>

<pallas_src>
import functools

import numpy as np
import jax
import jax.numpy as jnp
from jax.experimental import pallas as pl
from jax.experimental.pallas import tpu as pltpu


# ----------------------------------------------------------------------------
# Fused Tracker forward kernel: embedding prologue + T-step PF-LSTM recurrence
# + per-step readout, single invocation (grid=(1,)).
# ----------------------------------------------------------------------------
def _tracker_kernel(x_ref, w_emb_ref, b_emb_ref, w_ih_ref, b_gates_ref, w_hh_ref,
                    w_obs_x_ref, b_obs_ref, w_hfuse_ref, b_lab_ref,
                    sel_ref, selT_ref, h0_ref, c0_ref, p0_ref,
                    y_ref, pf_ref, *, H, B, P, T):
    N = P * B

    # ---- prologue (off the serial critical path): act_embedding + every ----
    # ---- x-dependent projection for all T steps and all particles at once ----
    x = x_ref[...]                                                          # (T*N, in)
    emb = jnp.maximum(
        jnp.dot(x, w_emb_ref[...], preferred_element_type=jnp.float32) + b_emb_ref[...],
        0.0)                                                                # (T*N, E)
    xg = (jnp.dot(emb, w_ih_ref[...], preferred_element_type=jnp.float32)
          + b_gates_ref[...])                                               # (T*N, 4H)
    xo = (jnp.dot(emb, w_obs_x_ref[...], preferred_element_type=jnp.float32)
          + b_obs_ref[...])                                                 # (T*N, 1)

    sel = sel_ref[...]          # (B, N): per-batch sum over particles (as a matmul)
    selT = selT_ref[...]        # (N, B): broadcast per-batch values to all particles
    w_hh = w_hh_ref[...]        # (H, 4H), gate order [i | f | o | g]
    w_hfuse = w_hfuse_ref[...]  # (H, 2): [w_obs_h | w_lab]
    b_lab = b_lab_ref[...]      # (1, 1)

    # recurrent state carried in registers across the unrolled loop
    h = h0_ref[...]             # (N, H)
    c = c0_ref[...]             # (N, H)
    p = p0_ref[...]             # (N, 1) log particle weights

    ys = []                     # per-step (B, 1) readouts
    pfs = []                    # per-step (N, 1) per-particle readouts

    for t in range(T):          # static, fully unrolled serial recurrence (T = 8)
        xg_t = xg[t * N:(t + 1) * N, :]                                     # (N, 4H)
        xo_t = xo[t * N:(t + 1) * N, :]                                     # (N, 1)

        # LSTM gates: only this matmul sits on the h->c->h serial chain
        gates = xg_t + jnp.dot(h, w_hh, preferred_element_type=jnp.float32)  # (N, 4H)
        sg = jax.nn.sigmoid(gates[:, 0:3 * H])       # i | f | o   (3H-wide EUP pass)
        g_g = jnp.tanh(gates[:, 3 * H:4 * H])        # g           (H-wide EUP pass)
        i_g = sg[:, 0:H]
        f_g = sg[:, H:2 * H]
        o_g = sg[:, 2 * H:3 * H]

        c = f_g * c + i_g * g_g
        # TODO(synk): PFLSTM reparameterization (Gaussian noise on the cell state) omitted — stochastic op.
        h = o_g * jnp.tanh(c)

        # fused h1-side matmul: col 0 = obs-likelihood logit part, col 1 = h1 @ w_lab
        hm = jnp.dot(h, w_hfuse, preferred_element_type=jnp.float32)        # (N, 2)
        obs_h = hm[:, 0:1]
        lab_h = hm[:, 1:2]

        # log particle-weight update + per-batch log-softmax over particles.
        # Global max is mathematically exact for the LSE; per-batch max only
        # matters if batch scales diverge wildly (not the case here).
        p1 = obs_h + xo_t + p                                               # (N, 1)
        m = jnp.max(p1, keepdims=True)                                      # (1, 1)
        e = jnp.exp(p1 - m)                                                 # (N, 1)
        s_b = jnp.dot(sel, e, preferred_element_type=jnp.float32)           # (B, 1) per-batch sums
        # one broadcast matmul carries both the exact LSE (for the carried log
        # weights) and the approx reciprocal of the sum (readout-only).
        bb = jnp.concatenate([m + jnp.log(s_b),
                              pl.reciprocal(s_b, approx=True)], axis=1)     # (B, 2)
        bcast = jnp.dot(selT, bb, preferred_element_type=jnp.float32)       # (N, 2)
        p = p1 - bcast[:, 0:1]                                              # normalized log weights
        wn = e * bcast[:, 1:2]                                              # normalized weights exp(p)
        # TODO(synk): stochastic soft-resampling (torch.multinomial particle gather) omitted.

        # per-step readouts (tail of Tracker.forward)
        # TODO(synk): hnn_dropout treated as identity (eval / dropout=0).
        y_lab = jnp.dot(sel, wn * lab_h, preferred_element_type=jnp.float32) + b_lab  # (B, 1)
        ys.append(jnp.tanh(y_lab))
        pfs.append(jnp.tanh(lab_h + b_lab))

    # single full-width store of the output slabs (no in-loop masked column stores)
    y_ref[...] = jnp.concatenate(ys, axis=1)        # (B, T)
    pf_ref[...] = jnp.concatenate(pfs, axis=1)      # (N, T)


# ----------------------------------------------------------------------------
# Wrapper
# ----------------------------------------------------------------------------
def tracker_forward(prev_window, params, h0, c0, p0, *, num_particles, hidden_dim):
    B, T, in_dim = prev_window.shape
    E = params["w_emb"].shape[1]
    H = hidden_dim
    P = num_particles
    N = P * B

    # (B, T, in) -> (T, B, in) -> replicate across particles -> (T*N, in).
    # Row t*N + p*B + b == (time t, particle p, batch b); matches the torch
    # .repeat(num_particles, 1, 1) layout (row n -> batch = n % B).
    x_tb = jnp.transpose(prev_window, (1, 0, 2)).astype(jnp.float32)        # (T, B, in)
    x_rep = jnp.broadcast_to(x_tb[:, None], (T, P, B, in_dim)).reshape(T * N, in_dim)

    # parameter pre-packing (done once, outside the serial recurrence)
    b_gates = params["b_ih"] + params["b_hh"]                               # (1, 4H)
    w_hfuse = jnp.concatenate([params["w_obs_h"], params["w_lab"]], axis=1)  # (H, 2)

    # particle <-> batch selector matrices, built once on the host
    col = np.arange(N) % B
    sel_np = (col[None, :] == np.arange(B)[:, None]).astype(np.float32)     # (B, N)
    sel = jnp.asarray(sel_np)
    selT = jnp.asarray(sel_np.T)                                            # (N, B)

    kernel = functools.partial(_tracker_kernel, H=H, B=B, P=P, T=T)
    full = lambda i: (0, 0)

    y2d, pf2d = pl.pallas_call(
        kernel,
        out_shape=(jax.ShapeDtypeStruct((B, T), jnp.float32),
                   jax.ShapeDtypeStruct((N, T), jnp.float32)),
        grid=(1,),
        in_specs=[
            pl.BlockSpec((T * N, in_dim), full),   # x, particle-replicated, time-major
            pl.BlockSpec((in_dim, E), full),       # w_emb
            pl.BlockSpec((1, E), full),            # b_emb
            pl.BlockSpec((E, 4 * H), full),        # w_ih        [i|f|o|g]
            pl.BlockSpec((1, 4 * H), full),        # b_ih + b_hh [i|f|o|g]
            pl.BlockSpec((H, 4 * H), full),        # w_hh        [i|f|o|g]
            pl.BlockSpec((E, 1), full),            # w_obs (x part)
            pl.BlockSpec((1, 1), full),            # b_obs
            pl.BlockSpec((H, 2), full),            # [w_obs_h | w_lab]
            pl.BlockSpec((1, 1), full),            # b_lab
            pl.BlockSpec((B, N), full),            # sel
            pl.BlockSpec((N, B), full),            # selT
            pl.BlockSpec((N, H), full),            # h0
            pl.BlockSpec((N, H), full),            # c0
            pl.BlockSpec((N, 1), full),            # p0 (log weights)
        ],
        out_specs=(pl.BlockSpec((B, T), full),
                   pl.BlockSpec((N, T), full)),
        compiler_params=pltpu.CompilerParams(dimension_semantics=("arbitrary",)),
    )(x_rep, params["w_emb"], params["b_emb"], params["w_ih"], b_gates, params["w_hh"],
      params["w_obs_x"], params["b_obs"], w_hfuse, params["b_lab"], sel, selT, h0, c0, p0)

    # back to the PyTorch output layout (tiny arrays; XLA transpose is negligible)
    y_out = y2d.T.reshape(T, B, 1)
    pf_out = pf2d.T.reshape(T, N, 1)
    return y_out, pf_out


def init_params(key, in_dim, emb_dim, hidden_dim):
    """Deterministic torch-like Linear init (uniform +/- 1/sqrt(fan_in)).

    Gate-packed weights (w_ih / b_ih / w_hh / b_hh) use the kernel's own
    [i | f | o | g] column order (random init, so only an internal convention).
    """
    keys = jax.random.split(key, 11)

    def lin(k, fan_in, shape):
        bound = 1.0 / np.sqrt(fan_in)
        return jax.random.uniform(k, shape, jnp.float32, -bound, bound)

    return dict(
        w_emb=lin(keys[0], in_dim, (in_dim, emb_dim)),
        b_emb=lin(keys[1], in_dim, (1, emb_dim)),
        w_ih=lin(keys[2], emb_dim, (emb_dim, 4 * hidden_dim)),
        b_ih=lin(keys[3], emb_dim, (1, 4 * hidden_dim)),
        w_hh=lin(keys[4], hidden_dim, (hidden_dim, 4 * hidden_dim)),
        b_hh=lin(keys[5], hidden_dim, (1, 4 * hidden_dim)),
        w_obs_h=lin(keys[6], hidden_dim + emb_dim, (hidden_dim, 1)),
        w_obs_x=lin(keys[7], hidden_dim + emb_dim, (emb_dim, 1)),
        b_obs=lin(keys[8], hidden_dim + emb_dim, (1, 1)),
        w_lab=lin(keys[9], hidden_dim, (hidden_dim, 1)),
        b_lab=lin(keys[10], hidden_dim, (1, 1)),
    )


if __name__ == "__main__":
    # args: batch_size=2, window_length=8 (input dim = 8*5 = 40), emb_act=32,
    #       h=32, num_particles=4, seq_len=8, dropout=0.0
    B, T, W5 = 2, 8, 8 * 5
    EMB, HID, P = 32, 32, 4
    N = P * B

    root = jax.random.PRNGKey(0)
    k_in, k_param, k_h, k_c = jax.random.split(root, 4)

    prev_window = jax.random.uniform(k_in, (B, T, W5), jnp.float32, -1.0, 1.0)
    params = init_params(k_param, W5, EMB, HID)

    # init_hidden('rand'): uniform h0/c0, uniform log weights log(1/P)
    h0 = jax.random.uniform(k_h, (N, HID), jnp.float32)
    c0 = jax.random.uniform(k_c, (N, HID), jnp.float32)
    p0 = jnp.full((N, 1), np.log(1.0 / P), jnp.float32)

    fwd = jax.jit(functools.partial(tracker_forward, num_particles=P, hidden_dim=HID))
    y_out, pf_out = fwd(prev_window, params, h0, c0, p0)
    jax.block_until_ready((y_out, pf_out))

    assert y_out.shape == (T, B, 1) and pf_out.shape == (T, N, 1)
    assert bool(jnp.all(jnp.isfinite(y_out))) and bool(jnp.all(jnp.isfinite(pf_out)))
    print("KERNEL_OK")
</pallas_src>

<mosaic_0001>
module attributes {stable_mosaic.version = 11 : i64} {
  func.func @_tracker_kernel(%arg0: i32, %arg1: memref<64x40xf32, #tpu.memory_space<vmem>>, %arg2: memref<40x32xf32, #tpu.memory_space<vmem>>, %arg3: memref<1x32xf32, #tpu.memory_space<vmem>>, %arg4: memref<32x128xf32, #tpu.memory_space<vmem>>, %arg5: memref<1x128xf32, #tpu.memory_space<vmem>>, %arg6: memref<32x128xf32, #tpu.memory_space<vmem>>, %arg7: memref<32x1xf32, #tpu.memory_space<vmem>>, %arg8: memref<1x1xf32, #tpu.memory_space<vmem>>, %arg9: memref<32x2xf32, #tpu.memory_space<vmem>>, %arg10: memref<1x1xf32, #tpu.memory_space<vmem>>, %arg11: memref<2x8xf32, #tpu.memory_space<vmem>>, %arg12: memref<8x2xf32, #tpu.memory_space<vmem>>, %arg13: memref<8x32xf32, #tpu.memory_space<vmem>>, %arg14: memref<8x32xf32, #tpu.memory_space<vmem>>, %arg15: memref<8x1xf32, #tpu.memory_space<vmem>>, %arg16: memref<2x8xf32, #tpu.memory_space<vmem>>, %arg17: memref<8x8xf32, #tpu.memory_space<vmem>>) attributes {dimension_semantics = [#tpu.dimension_semantics<arbitrary>], iteration_bounds = array<i64: 1>, scalar_prefetch = 0 : i64, scratch_operands = 0 : i64, tpu.core_type = #tpu.core_type<tc>, window_params = [{pipeline_mode = #tpu.pipeline_mode<synchronous>, transform_indices = @transform_0, window_bounds = array<i64: 64, 40>}, {pipeline_mode = #tpu.pipeline_mode<synchronous>, transform_indices = @transform_1, window_bounds = array<i64: 40, 32>}, {pipeline_mode = #tpu.pipeline_mode<synchronous>, transform_indices = @transform_2, window_bounds = array<i64: 1, 32>}, {pipeline_mode = #tpu.pipeline_mode<synchronous>, transform_indices = @transform_3, window_bounds = array<i64: 32, 128>}, {pipeline_mode = #tpu.pipeline_mode<synchronous>, transform_indices = @transform_4, window_bounds = array<i64: 1, 128>}, {pipeline_mode = #tpu.pipeline_mode<synchronous>, transform_indices = @transform_5, window_bounds = array<i64: 32, 128>}, {pipeline_mode = #tpu.pipeline_mode<synchronous>, transform_indices = @transform_6, window_bounds = array<i64: 32, 1>}, {pipeline_mode = #tpu.pipeline_mode<synchronous>, transform_indices = @transform_7, window_bounds = array<i64: 1, 1>}, {pipeline_mode = #tpu.pipeline_mode<synchronous>, transform_indices = @transform_8, window_bounds = array<i64: 32, 2>}, {pipeline_mode = #tpu.pipeline_mode<synchronous>, transform_indices = @transform_9, window_bounds = array<i64: 1, 1>}, {pipeline_mode = #tpu.pipeline_mode<synchronous>, transform_indices = @transform_10, window_bounds = array<i64: 2, 8>}, {pipeline_mode = #tpu.pipeline_mode<synchronous>, transform_indices = @transform_11, window_bounds = array<i64: 8, 2>}, {pipeline_mode = #tpu.pipeline_mode<synchronous>, transform_indices = @transform_12, window_bounds = array<i64: 8, 32>}, {pipeline_mode = #tpu.pipeline_mode<synchronous>, transform_indices = @transform_13, window_bounds = array<i64: 8, 32>}, {pipeline_mode = #tpu.pipeline_mode<synchronous>, transform_indices = @transform_14, window_bounds = array<i64: 8, 1>}, {pipeline_mode = #tpu.pipeline_mode<synchronous>, transform_indices = @transform_15, window_bounds = array<i64: 2, 8>}, {pipeline_mode = #tpu.pipeline_mode<synchronous>, transform_indices = @transform_16, window_bounds = array<i64: 8, 8>}]} {
    %c0 = arith.constant 0 : index
    %c0_0 = arith.constant 0 : index
    %0 = vector.load %arg1[%c0, %c0_0] : memref<64x40xf32, #tpu.memory_space<vmem>>, vector<64x40xf32>
    %c0_1 = arith.constant 0 : index
    %c0_2 = arith.constant 0 : index
    %1 = vector.load %arg2[%c0_1, %c0_2] : memref<40x32xf32, #tpu.memory_space<vmem>>, vector<40x32xf32>
    %cst = arith.constant dense<0.000000e+00> : vector<64x32xf32>
    %2 = tpu.matmul %0, %1, %cst {dimension_numbers = #tpu.dot_dimension_numbers<[1], [0], [0], [1], [0, 0, 1, 1], [], []>} : vector<64x40xf32>, vector<40x32xf32>, vector<64x32xf32> -> vector<64x32xf32>
    %c0_3 = arith.constant 0 : index
    %c0_4 = arith.constant 0 : index
    %3 = vector.load %arg3[%c0_3, %c0_4] : memref<1x32xf32, #tpu.memory_space<vmem>>, vector<1x32xf32>
    %4 = vector.broadcast %3 : vector<1x32xf32> to vector<64x32xf32>
    %5 = arith.addf %2, %4 : vector<64x32xf32>
    %cst_5 = arith.constant 0.000000e+00 : f32
    %6 = vector.broadcast %cst_5 : f32 to vector<64x32xf32>
    %7 = arith.maximumf %5, %6 : vector<64x32xf32>
    %c0_6 = arith.constant 0 : index
    %c0_7 = arith.constant 0 : index
    %8 = vector.load %arg4[%c0_6, %c0_7] : memref<32x128xf32, #tpu.memory_space<vmem>>, vector<32x128xf32>
    %cst_8 = arith.constant dense<0.000000e+00> : vector<64x128xf32>
    %9 = tpu.matmul %7, %8, %cst_8 {dimension_numbers = #tpu.dot_dimension_numbers<[1], [0], [0], [1], [0, 0, 1, 1], [], []>} : vector<64x32xf32>, vector<32x128xf32>, vector<64x128xf32> -> vector<64x128xf32>
    %c0_9 = arith.constant 0 : index
    %c0_10 = arith.constant 0 : index
    %10 = vector.load %arg5[%c0_9, %c0_10] : memref<1x128xf32, #tpu.memory_space<vmem>>, vector<1x128xf32>
    %11 = vector.broadcast %10 : vector<1x128xf32> to vector<64x128xf32>
    %12 = arith.addf %9, %11 : vector<64x128xf32>
    %c0_11 = arith.constant 0 : index
    %c0_12 = arith.constant 0 : index
    %13 = vector.load %arg7[%c0_11, %c0_12] : memref<32x1xf32, #tpu.memory_space<vmem>>, vector<32x1xf32>
    %cst_13 = arith.constant dense<0.000000e+00> : vector<64x1xf32>
    %14 = tpu.matmul %7, %13, %cst_13 {dimension_numbers = #tpu.dot_dimension_numbers<[1], [0], [0], [1], [0, 0, 1, 1], [], []>} : vector<64x32xf32>, vector<32x1xf32>, vector<64x1xf32> -> vector<64x1xf32>
    %c0_14 = arith.constant 0 : index
    %c0_15 = arith.constant 0 : index
    %15 = vector.load %arg8[%c0_14, %c0_15] : memref<1x1xf32, #tpu.memory_space<vmem>>, vector<1x1xf32>
    %16 = vector.broadcast %15 : vector<1x1xf32> to vector<64x1xf32>
    %17 = arith.addf %14, %16 : vector<64x1xf32>
    %c0_16 = arith.constant 0 : index
    %c0_17 = arith.constant 0 : index
    %18 = vector.load %arg11[%c0_16, %c0_17] : memref<2x8xf32, #tpu.memory_space<vmem>>, vector<2x8xf32>
    %c0_18 = arith.constant 0 : index
    %c0_19 = arith.constant 0 : index
    %19 = vector.load %arg12[%c0_18, %c0_19] : memref<8x2xf32, #tpu.memory_space<vmem>>, vector<8x2xf32>
    %c0_20 = arith.constant 0 : index
    %c0_21 = arith.constant 0 : index
    %20 = vector.load %arg6[%c0_20, %c0_21] : memref<32x128xf32, #tpu.memory_space<vmem>>, vector<32x128xf32>
    %c0_22 = arith.constant 0 : index
    %c0_23 = arith.constant 0 : index
    %21 = vector.load %arg9[%c0_22, %c0_23] : memref<32x2xf32, #tpu.memory_space<vmem>>, vector<32x2xf32>
    %c0_24 = arith.constant 0 : index
    %c0_25 = arith.constant 0 : index
    %22 = vector.load %arg10[%c0_24, %c0_25] : memref<1x1xf32, #tpu.memory_space<vmem>>, vector<1x1xf32>
    %c0_26 = arith.constant 0 : index
    %c0_27 = arith.constant 0 : index
    %23 = vector.load %arg13[%c0_26, %c0_27] : memref<8x32xf32, #tpu.memory_space<vmem>>, vector<8x32xf32>
    %c0_28 = arith.constant 0 : index
    %c0_29 = arith.constant 0 : index
    %24 = vector.load %arg14[%c0_28, %c0_29] : memref<8x32xf32, #tpu.memory_space<vmem>>, vector<8x32xf32>
    %c0_30 = arith.constant 0 : index
    %c0_31 = arith.constant 0 : index
    %25 = vector.load %arg15[%c0_30, %c0_31] : memref<8x1xf32, #tpu.memory_space<vmem>>, vector<8x1xf32>
    %26 = vector.extract_strided_slice %12 {offsets = [0, 0], sizes = [8, 128], strides = [1, 1]} : vector<64x128xf32> to vector<8x128xf32>
    %27 = vector.extract_strided_slice %17 {offsets = [0, 0], sizes = [8, 1], strides = [1, 1]} : vector<64x1xf32> to vector<8x1xf32>
    %cst_32 = arith.constant dense<0.000000e+00> : vector<8x128xf32>
    %28 = tpu.matmul %23, %20, %cst_32 {dimension_numbers = #tpu.dot_dimension_numbers<[1], [0], [0], [1], [0, 0, 1, 1], [], []>} : vector<8x32xf32>, vector<32x128xf32>, vector<8x128xf32> -> vector<8x128xf32>
    %29 = arith.addf %26, %28 : vector<8x128xf32>
    %30 = vector.extract_strided_slice %29 {offsets = [0, 0], sizes = [8, 96], strides = [1, 1]} : vector<8x128xf32> to vector<8x96xf32>
    %31 = arith.negf %30 : vector<8x96xf32>
    %32 = math.exp %31 : vector<8x96xf32>
    %cst_33 = arith.constant 1.000000e+00 : f32
    %33 = vector.broadcast %cst_33 : f32 to vector<8x96xf32>
    %34 = arith.addf %33, %32 : vector<8x96xf32>
    %35 = arith.divf %33, %34 : vector<8x96xf32>
    %36 = vector.extract_strided_slice %29 {offsets = [0, 96], sizes = [8, 32], strides = [1, 1]} : vector<8x128xf32> to vector<8x32xf32>
    %37 = math.tanh %36 : vector<8x32xf32>
    %38 = vector.extract_strided_slice %35 {offsets = [0, 0], sizes = [8, 32], strides = [1, 1]} : vector<8x96xf32> to vector<8x32xf32>
    %39 = vector.extract_strided_slice %35 {offsets = [0, 32], sizes = [8, 32], strides = [1, 1]} : vector<8x96xf32> to vector<8x32xf32>
    %40 = vector.extract_strided_slice %35 {offsets = [0, 64], sizes = [8, 32], strides = [1, 1]} : vector<8x96xf32> to vector<8x32xf32>
    %41 = arith.mulf %39, %24 : vector<8x32xf32>
    %42 = arith.mulf %38, %37 : vector<8x32xf32>
    %43 = arith.addf %41, %42 : vector<8x32xf32>
    %44 = math.tanh %43 : vector<8x32xf32>
    %45 = arith.mulf %40, %44 : vector<8x32xf32>
    %cst_34 = arith.constant dense<0.000000e+00> : vector<8x2xf32>
    %46 = tpu.matmul %45, %21, %cst_34 {dimension_numbers = #tpu.dot_dimension_numbers<[1], [0], [0], [1], [0, 0, 1, 1], [], []>} : vector<8x32xf32>, vector<32x2xf32>, vector<8x2xf32> -> vector<8x2xf32>
    %47 = vector.extract_strided_slice %46 {offsets = [0, 0], sizes = [8, 1], strides = [1, 1]} : vector<8x2xf32> to vector<8x1xf32>
    %48 = vector.extract_strided_slice %46 {offsets = [0, 1], sizes = [8, 1], strides = [1, 1]} : vector<8x2xf32> to vector<8x1xf32>
    %49 = arith.addf %47, %27 : vector<8x1xf32>
    %50 = arith.addf %49, %25 : vector<8x1xf32>
    %51 = vector.shape_cast %50 : vector<8x1xf32> to vector<1x8x1xf32>
    %cst_35 = arith.constant dense<0xFF800000> : vector<1xf32>
    %52 = vector.multi_reduction <maximumf>, %51, %cst_35 [1, 2] : vector<1x8x1xf32> to vector<1xf32>
    %53 = vector.shape_cast %52 : vector<1xf32> to vector<1x1x1xf32>
    %54 = vector.extract %53[0, 0, 0] : f32 from vector<1x1x1xf32>
    %55 = vector.broadcast %54 : f32 to vector<1x1xf32>
    %56 = vector.broadcast %55 : vector<1x1xf32> to vector<8x1xf32>
    %57 = arith.subf %50, %56 : vector<8x1xf32>
    %58 = math.exp %57 : vector<8x1xf32>
    %cst_36 = arith.constant dense<0.000000e+00> : vector<2x1xf32>
    %59 = tpu.matmul %18, %58, %cst_36 {dimension_numbers = #tpu.dot_dimension_numbers<[1], [0], [0], [1], [0, 0, 1, 1], [], []>} : vector<2x8xf32>, vector<8x1xf32>, vector<2x1xf32> -> vector<2x1xf32>
    %60 = math.log %59 : vector<2x1xf32>
    %61 = vector.broadcast %55 : vector<1x1xf32> to vector<2x1xf32>
    %62 = arith.addf %61, %60 : vector<2x1xf32>
    %63 = tpu.reciprocal %59 {approx = true} : vector<2x1xf32> -> vector<2x1xf32>
    %64 = tpu.concatenate %62, %63 in 1 : vector<2x1xf32>, vector<2x1xf32> -> vector<2x2xf32>
    %cst_37 = arith.constant dense<0.000000e+00> : vector<8x2xf32>
    %65 = tpu.matmul %19, %64, %cst_37 {dimension_numbers = #tpu.dot_dimension_numbers<[1], [0], [0], [1], [0, 0, 1, 1], [], []>} : vector<8x2xf32>, vector<2x2xf32>, vector<8x2xf32> -> vector<8x2xf32>
    %66 = vector.extract_strided_slice %65 {offsets = [0, 0], sizes = [8, 1], strides = [1, 1]} : vector<8x2xf32> to vector<8x1xf32>
    %67 = arith.subf %50, %66 : vector<8x1xf32>
    %68 = vector.extract_strided_slice %65 {offsets = [0, 1], sizes = [8, 1], strides = [1, 1]} : vector<8x2xf32> to vector<8x1xf32>
    %69 = arith.mulf %58, %68 : vector<8x1xf32>
    %70 = arith.mulf %69, %48 : vector<8x1xf32>
    %cst_38 = arith.constant dense<0.000000e+00> : vector<2x1xf32>
    %71 = tpu.matmul %18, %70, %cst_38 {dimension_numbers = #tpu.dot_dimension_numbers<[1], [0], [0], [1], [0, 0, 1, 1], [], []>} : vector<2x8xf32>, vector<8x1xf32>, vector<2x1xf32> -> vector<2x1xf32>
    %72 = vector.broadcast %22 : vector<1x1xf32> to vector<2x1xf32>
    %73 = arith.addf %71, %72 : vector<2x1xf32>
    %74 = math.tanh %73 : vector<2x1xf32>
    %75 = vector.broadcast %22 : vector<1x1xf32> to vector<8x1xf32>
    %76 = arith.addf %48, %75 : vector<8x1xf32>
    %77 = math.tanh %76 : vector<8x1xf32>
    %78 = vector.extract_strided_slice %12 {offsets = [8, 0], sizes = [8, 128], strides = [1, 1]} : vector<64x128xf32> to vector<8x128xf32>
    %79 = vector.extract_strided_slice %17 {offsets = [8, 0], sizes = [8, 1], strides = [1, 1]} : vector<64x1xf32> to vector<8x1xf32>
    %cst_39 = arith.constant dense<0.000000e+00> : vector<8x128xf32>
    %80 = tpu.matmul %45, %20, %cst_39 {dimension_numbers = #tpu.dot_dimension_numbers<[1], [0], [0], [1], [0, 0, 1, 1], [], []>} : vector<8x32xf32>, vector<32x128xf32>, vector<8x128xf32> -> vector<8x128xf32>
    %81 = arith.addf %78, %80 : vector<8x128xf32>
    %82 = vector.extract_strided_slice %81 {offsets = [0, 0], sizes = [8, 96], strides = [1, 1]} : vector<8x128xf32> to vector<8x96xf32>
    %83 = arith.negf %82 : vector<8x96xf32>
    %84 = math.exp %83 : vector<8x96xf32>
    %cst_40 = arith.constant 1.000000e+00 : f32
    %85 = vector.broadcast %cst_40 : f32 to vector<8x96xf32>
    %86 = arith.addf %85, %84 : vector<8x96xf32>
    %87 = arith.divf %85, %86 : vector<8x96xf32>
    %88 = vector.extract_strided_slice %81 {offsets = [0, 96], sizes = [8, 32], strides = [1, 1]} : vector<8x128xf32> to vector<8x32xf32>
    %89 = math.tanh %88 : vector<8x32xf32>
    %90 = vector.extract_strided_slice %87 {offsets = [0, 0], sizes = [8, 32], strides = [1, 1]} : vector<8x96xf32> to vector<8x32xf32>
    %91 = vector.extract_strided_slice %87 {offsets = [0, 32], sizes = [8, 32], strides = [1, 1]} : vector<8x96xf32> to vector<8x32xf32>
    %92 = vector.extract_strided_slice %87 {offsets = [0, 64], sizes = [8, 32], strides = [1, 1]} : vector<8x96xf32> to vector<8x32xf32>
    %93 = arith.mulf %91, %43 : vector<8x32xf32>
    %94 = arith.mulf %90, %89 : vector<8x32xf32>
    %95 = arith.addf %93, %94 : vector<8x32xf32>
    %96 = math.tanh %95 : vector<8x32xf32>
    %97 = arith.mulf %92, %96 : vector<8x32xf32>
    %cst_41 = arith.constant dense<0.000000e+00> : vector<8x2xf32>
    %98 = tpu.matmul %97, %21, %cst_41 {dimension_numbers = #tpu.dot_dimension_numbers<[1], [0], [0], [1], [0, 0, 1, 1], [], []>} : vector<8x32xf32>, vector<32x2xf32>, vector<8x2xf32> -> vector<8x2xf32>
    %99 = vector.extract_strided_slice %98 {offsets = [0, 0], sizes = [8, 1], strides = [1, 1]} : vector<8x2xf32> to vector<8x1xf32>
    %100 = vector.extract_strided_slice %98 {offsets = [0, 1], sizes = [8, 1], strides = [1, 1]} : vector<8x2xf32> to vector<8x1xf32>
    %101 = arith.addf %99, %79 : vector<8x1xf32>
    %102 = arith.addf %101, %67 : vector<8x1xf32>
    %103 = vector.shape_cast %102 : vector<8x1xf32> to vector<1x8x1xf32>
    %cst_42 = arith.constant dense<0xFF800000> : vector<1xf32>
    %104 = vector.multi_reduction <maximumf>, %103, %cst_42 [1, 2] : vector<1x8x1xf32> to vector<1xf32>
    %105 = vector.shape_cast %104 : vector<1xf32> to vector<1x1x1xf32>
    %106 = vector.extract %105[0, 0, 0] : f32 from vector<1x1x1xf32>
    %107 = vector.broadcast %106 : f32 to vector<1x1xf32>
    %108 = vector.broadcast %107 : vector<1x1xf32> to vector<8x1xf32>
    %109 = arith.subf %102, %108 : vector<8x1xf32>
    %110 = math.exp %109 : vector<8x1xf32>
    %cst_43 = arith.constant dense<0.000000e+00> : vector<2x1xf32>
    %111 = tpu.matmul %18, %110, %cst_43 {dimension_numbers = #tpu.dot_dimension_numbers<[1], [0], [0], [1], [0, 0, 1, 1], [], []>} : vector<2x8xf32>, vector<8x1xf32>, vector<2x1xf32> -> vector<2x1xf32>
    %112 = math.log %111 : vector<2x1xf32>
    %113 = vector.broadcast %107 : vector<1x1xf32> to vector<2x1xf32>
    %114 = arith.addf %113, %112 : vector<2x1xf32>
    %115 = tpu.reciprocal %111 {approx = true} : vector<2x1xf32> -> vector<2x1xf32>
    %116 = tpu.concatenate %114, %115 in 1 : vector<2x1xf32>, vector<2x1xf32> -> vector<2x2xf32>
    %cst_44 = arith.constant dense<0.000000e+00> : vector<8x2xf32>
    %117 = tpu.matmul %19, %116, %cst_44 {dimension_numbers = #tpu.dot_dimension_numbers<[1], [0], [0], [1], [0, 0, 1, 1], [], []>} : vector<8x2xf32>, vector<2x2xf32>, vector<8x2xf32> -> vector<8x2xf32>
    %118 = vector.extract_strided_slice %117 {offsets = [0, 0], sizes = [8, 1], strides = [1, 1]} : vector<8x2xf32> to vector<8x1xf32>
    %119 = arith.subf %102, %118 : vector<8x1xf32>
    %120 = vector.extract_strided_slice %117 {offsets = [0, 1], sizes = [8, 1], strides = [1, 1]} : vector<8x2xf32> to vector<8x1xf32>
    %121 = arith.mulf %110, %120 : vector<8x1xf32>
    %122 = arith.mulf %121, %100 : vector<8x1xf32>
    %cst_45 = arith.constant dense<0.000000e+00> : vector<2x1xf32>
    %123 = tpu.matmul %18, %122, %cst_45 {dimension_numbers = #tpu.dot_dimension_numbers<[1], [0], [0], [1], [0, 0, 1, 1], [], []>} : vector<2x8xf32>, vector<8x1xf32>, vector<2x1xf32> -> vector<2x1xf32>
    %124 = vector.broadcast %22 : vector<1x1xf32> to vector<2x1xf32>
    %125 = arith.addf %123, %124 : vector<2x1xf32>
    %126 = math.tanh %125 : vector<2x1xf32>
    %127 = vector.broadcast %22 : vector<1x1xf32> to vector<8x1xf32>
    %128 = arith.addf %100, %127 : vector<8x1xf32>
    %129 = math.tanh %128 : vector<8x1xf32>
    %130 = vector.extract_strided_slice %12 {offsets = [16, 0], sizes = [8, 128], strides = [1, 1]} : vector<64x128xf32> to vector<8x128xf32>
    %131 = vector.extract_strided_slice %17 {offsets = [16, 0], sizes = [8, 1], strides = [1, 1]} : vector<64x1xf32> to vector<8x1xf32>
    %cst_46 = arith.constant dense<0.000000e+00> : vector<8x128xf32>
    %132 = tpu.matmul %97, %20, %cst_46 {dimension_numbers = #tpu.dot_dimension_numbers<[1], [0], [0], [1], [0, 0, 1, 1], [], []>} : vector<8x32xf32>, vector<32x128xf32>, vector<8x128xf32> -> vector<8x128xf32>
    %133 = arith.addf %130, %132 : vector<8x128xf32>
    %134 = vector.extract_strided_slice %133 {offsets = [0, 0], sizes = [8, 96], strides = [1, 1]} : vector<8x128xf32> to vector<8x96xf32>
    %135 = arith.negf %134 : vector<8x96xf32>
    %136 = math.exp %135 : vector<8x96xf32>
    %cst_47 = arith.constant 1.000000e+00 : f32
    %137 = vector.broadcast %cst_47 : f32 to vector<8x96xf32>
    %138 = arith.addf %137, %136 : vector<8x96xf32>
    %139 = arith.divf %137, %138 : vector<8x96xf32>
    %140 = vector.extract_strided_slice %133 {offsets = [0, 96], sizes = [8, 32], strides = [1, 1]} : vector<8x128xf32> to vector<8x32xf32>
    %141 = math.tanh %140 : vector<8x32xf32>
    %142 = vector.extract_strided_slice %139 {offsets = [0, 0], sizes = [8, 32], strides = [1, 1]} : vector<8x96xf32> to vector<8x32xf32>
    %143 = vector.extract_strided_slice %139 {offsets = [0, 32], sizes = [8, 32], strides = [1, 1]} : vector<8x96xf32> to vector<8x32xf32>
    %144 = vector.extract_strided_slice %139 {offsets = [0, 64], sizes = [8, 32], strides = [1, 1]} : vector<8x96xf32> to vector<8x32xf32>
    %145 = arith.mulf %143, %95 : vector<8x32xf32>
    %146 = arith.mulf %142, %141 : vector<8x32xf32>
    %147 = arith.addf %145, %146 : vector<8x32xf32>
    %148 = math.tanh %147 : vector<8x32xf32>
    %149 = arith.mulf %144, %148 : vector<8x32xf32>
    %cst_48 = arith.constant dense<0.000000e+00> : vector<8x2xf32>
    %150 = tpu.matmul %149, %21, %cst_48 {dimension_numbers = #tpu.dot_dimension_numbers<[1], [0], [0], [1], [0, 0, 1, 1], [], []>} : vector<8x32xf32>, vector<32x2xf32>, vector<8x2xf32> -> vector<8x2xf32>
    %151 = vector.extract_strided_slice %150 {offsets = [0, 0], sizes = [8, 1], strides = [1, 1]} : vector<8x2xf32> to vector<8x1xf32>
    %152 = vector.extract_strided_slice %150 {offsets = [0, 1], sizes = [8, 1], strides = [1, 1]} : vector<8x2xf32> to vector<8x1xf32>
    %153 = arith.addf %151, %131 : vector<8x1xf32>
    %154 = arith.addf %153, %119 : vector<8x1xf32>
    %155 = vector.shape_cast %154 : vector<8x1xf32> to vector<1x8x1xf32>
    %cst_49 = arith.constant dense<0xFF800000> : vector<1xf32>
    %156 = vector.multi_reduction <maximumf>, %155, %cst_49 [1, 2] : vector<1x8x1xf32> to vector<1xf32>
    %157 = vector.shape_cast %156 : vector<1xf32> to vector<1x1x1xf32>
    %158 = vector.extract %157[0, 0, 0] : f32 from vector<1x1x1xf32>
    %159 = vector.broadcast %158 : f32 to vector<1x1xf32>
    %160 = vector.broadcast %159 : vector<1x1xf32> to vector<8x1xf32>
    %161 = arith.subf %154, %160 : vector<8x1xf32>
    %162 = math.exp %161 : vector<8x1xf32>
    %cst_50 = arith.constant dense<0.000000e+00> : vector<2x1xf32>
    %163 = tpu.matmul %18, %162, %cst_50 {dimension_numbers = #tpu.dot_dimension_numbers<[1], [0], [0], [1], [0, 0, 1, 1], [], []>} : vector<2x8xf32>, vector<8x1xf32>, vector<2x1xf32> -> vector<2x1xf32>
    %164 = math.log %163 : vector<2x1xf32>
    %165 = vector.broadcast %159 : vector<1x1xf32> to vector<2x1xf32>
    %166 = arith.addf %165, %164 : vector<2x1xf32>
    %167 = tpu.reciprocal %163 {approx = true} : vector<2x1xf32> -> vector<2x1xf32>
    %168 = tpu.concatenate %166, %167 in 1 : vector<2x1xf32>, vector<2x1xf32> -> vector<2x2xf32>
    %cst_51 = arith.constant dense<0.000000e+00> : vector<8x2xf32>
    %169 = tpu.matmul %19, %168, %cst_51 {dimension_numbers = #tpu.dot_dimension_numbers<[1], [0], [0], [1], [0, 0, 1, 1], [], []>} : vector<8x2xf32>, vector<2x2xf32>, vector<8x2xf32> -> vector<8x2xf32>
    %170 = vector.extract_strided_slice %169 {offsets = [0, 0], sizes = [8, 1], strides = [1, 1]} : vector<8x2xf32> to vector<8x1xf32>
    %171 = arith.subf %154, %170 : vector<8x1xf32>
    %172 = vector.extract_strided_slice %169 {offsets = [0, 1], sizes = [8, 1], strides = [1, 1]} : vector<8x2xf32> to vector<8x1xf32>
    %173 = arith.mulf %162, %172 : vector<8x1xf32>
    %174 = arith.mulf %173, %152 : vector<8x1xf32>
    %cst_52 = arith.constant dense<0.000000e+00> : vector<2x1xf32>
    %175 = tpu.matmul %18, %174, %cst_52 {dimension_numbers = #tpu.dot_dimension_numbers<[1], [0], [0], [1], [0, 0, 1, 1], [], []>} : vector<2x8xf32>, vector<8x1xf32>, vector<2x1xf32> -> vector<2x1xf32>
    %176 = vector.broadcast %22 : vector<1x1xf32> to vector<2x1xf32>
    %177 = arith.addf %175, %176 : vector<2x1xf32>
    %178 = math.tanh %177 : vector<2x1xf32>
    %179 = vector.broadcast %22 : vector<1x1xf32> to vector<8x1xf32>
    %180 = arith.addf %152, %179 : vector<8x1xf32>
    %181 = math.tanh %180 : vector<8x1xf32>
    %182 = vector.extract_strided_slice %12 {offsets = [24, 0], sizes = [8, 128], strides = [1, 1]} : vector<64x128xf32> to vector<8x128xf32>
    %183 = vector.extract_strided_slice %17 {offsets = [24, 0], sizes = [8, 1], strides = [1, 1]} : vector<64x1xf32> to vector<8x1xf32>
    %cst_53 = arith.constant dense<0.000000e+00> : vector<8x128xf32>
    %184 = tpu.matmul %149, %20, %cst_53 {dimension_numbers = #tpu.dot_dimension_numbers<[1], [0], [0], [1], [0, 0, 1, 1], [], []>} : vector<8x32xf32>, vector<32x128xf32>, vector<8x128xf32> -> vector<8x128xf32>
    %185 = arith.addf %182, %184 : vector<8x128xf32>
    %186 = vector.extract_strided_slice %185 {offsets = [0, 0], sizes = [8, 96], strides = [1, 1]} : vector<8x128xf32> to vector<8x96xf32>
    %187 = arith.negf %186 : vector<8x96xf32>
    %188 = math.exp %187 : vector<8x96xf32>
    %cst_54 = arith.constant 1.000000e+00 : f32
    %189 = vector.broadcast %cst_54 : f32 to vector<8x96xf32>
    %190 = arith.addf %189, %188 : vector<8x96xf32>
    %191 = arith.divf %189, %190 : vector<8x96xf32>
    %192 = vector.extract_strided_slice %185 {offsets = [0, 96], sizes = [8, 32], strides = [1, 1]} : vector<8x128xf32> to vector<8x32xf32>
    %193 = math.tanh %192 : vector<8x32xf32>
    %194 = vector.extract_strided_slice %191 {offsets = [0, 0], sizes = [8, 32], strides = [1, 1]} : vector<8x96xf32> to vector<8x32xf32>
    %195 = vector.extract_strided_slice %191 {offsets = [0, 32], sizes = [8, 32], strides = [1, 1]} : vector<8x96xf32> to vector<8x32xf32>
    %196 = vector.extract_strided_slice %191 {offsets = [0, 64], sizes = [8, 32], strides = [1, 1]} : vector<8x96xf32> to vector<8x32xf32>
    %197 = arith.mulf %195, %147 : vector<8x32xf32>
    %198 = arith.mulf %194, %193 : vector<8x32xf32>
    %199 = arith.addf %197, %198 : vector<8x32xf32>
    %200 = math.tanh %199 : vector<8x32xf32>
    %201 = arith.mulf %196, %200 : vector<8x32xf32>
    %cst_55 = arith.constant dense<0.000000e+00> : vector<8x2xf32>
    %202 = tpu.matmul %201, %21, %cst_55 {dimension_numbers = #tpu.dot_dimension_numbers<[1], [0], [0], [1], [0, 0, 1, 1], [], []>} : vector<8x32xf32>, vector<32x2xf32>, vector<8x2xf32> -> vector<8x2xf32>
    %203 = vector.extract_strided_slice %202 {offsets = [0, 0], sizes = [8, 1], strides = [1, 1]} : vector<8x2xf32> to vector<8x1xf32>
    %204 = vector.extract_strided_slice %202 {offsets = [0, 1], sizes = [8, 1], strides = [1, 1]} : vector<8x2xf32> to vector<8x1xf32>
    %205 = arith.addf %203, %183 : vector<8x1xf32>
    %206 = arith.addf %205, %171 : vector<8x1xf32>
    %207 = vector.shape_cast %206 : vector<8x1xf32> to vector<1x8x1xf32>
    %cst_56 = arith.constant dense<0xFF800000> : vector<1xf32>
    %208 = vector.multi_reduction <maximumf>, %207, %cst_56 [1, 2] : vector<1x8x1xf32> to vector<1xf32>
    %209 = vector.shape_cast %208 : vector<1xf32> to vector<1x1x1xf32>
    %210 = vector.extract %209[0, 0, 0] : f32 from vector<1x1x1xf32>
    %211 = vector.broadcast %210 : f32 to vector<1x1xf32>
    %212 = vector.broadcast %211 : vector<1x1xf32> to vector<8x1xf32>
    %213 = arith.subf %206, %212 : vector<8x1xf32>
    %214 = math.exp %213 : vector<8x1xf32>
    %cst_57 = arith.constant dense<0.000000e+00> : vector<2x1xf32>
    %215 = tpu.matmul %18, %214, %cst_57 {dimension_numbers = #tpu.dot_dimension_numbers<[1], [0], [0], [1], [0, 0, 1, 1], [], []>} : vector<2x8xf32>, vector<8x1xf32>, vector<2x1xf32> -> vector<2x1xf32>
    %216 = math.log %215 : vector<2x1xf32>
    %217 = vector.broadcast %211 : vector<1x1xf32> to vector<2x1xf32>
    %218 = arith.addf %217, %216 : vector<2x1xf32>
    %219 = tpu.reciprocal %215 {approx = true} : vector<2x1xf32> -> vector<2x1xf32>
    %220 = tpu.concatenate %218, %219 in 1 : vector<2x1xf32>, vector<2x1xf32> -> vector<2x2xf32>
    %cst_58 = arith.constant dense<0.000000e+00> : vector<8x2xf32>
    %221 = tpu.matmul %19, %220, %cst_58 {dimension_numbers = #tpu.dot_dimension_numbers<[1], [0], [0], [1], [0, 0, 1, 1], [], []>} : vector<8x2xf32>, vector<2x2xf32>, vector<8x2xf32> -> vector<8x2xf32>
    %222 = vector.extract_strided_slice %221 {offsets = [0, 0], sizes = [8, 1], strides = [1, 1]} : vector<8x2xf32> to vector<8x1xf32>
    %223 = arith.subf %206, %222 : vector<8x1xf32>
    %224 = vector.extract_strided_slice %221 {offsets = [0, 1], sizes = [8, 1], strides = [1, 1]} : vector<8x2xf32> to vector<8x1xf32>
    %225 = arith.mulf %214, %224 : vector<8x1xf32>
    %226 = arith.mulf %225, %204 : vector<8x1xf32>
    %cst_59 = arith.constant dense<0.000000e+00> : vector<2x1xf32>
    %227 = tpu.matmul %18, %226, %cst_59 {dimension_numbers = #tpu.dot_dimension_numbers<[1], [0], [0], [1], [0, 0, 1, 1], [], []>} : vector<2x8xf32>, vector<8x1xf32>, vector<2x1xf32> -> vector<2x1xf32>
    %228 = vector.broadcast %22 : vector<1x1xf32> to vector<2x1xf32>
    %229 = arith.addf %227, %228 : vector<2x1xf32>
    %230 = math.tanh %229 : vector<2x1xf32>
    %231 = vector.broadcast %22 : vector<1x1xf32> to vector<8x1xf32>
    %232 = arith.addf %204, %231 : vector<8x1xf32>
    %233 = math.tanh %232 : vector<8x1xf32>
    %234 = vector.extract_strided_slice %12 {offsets = [32, 0], sizes = [8, 128], strides = [1, 1]} : vector<64x128xf32> to vector<8x128xf32>
    %235 = vector.extract_strided_slice %17 {offsets = [32, 0], sizes = [8, 1], strides = [1, 1]} : vector<64x1xf32> to vector<8x1xf32>
    %cst_60 = arith.constant dense<0.000000e+00> : vector<8x128xf32>
    %236 = tpu.matmul %201, %20, %cst_60 {dimension_numbers = #tpu.dot_dimension_numbers<[1], [0], [0], [1], [0, 0, 1, 1], [], []>} : vector<8x32xf32>, vector<32x128xf32>, vector<8x128xf32> -> vector<8x128xf32>
    %237 = arith.addf %234, %236 : vector<8x128xf32>
    %238 = vector.extract_strided_slice %237 {offsets = [0, 0], sizes = [8, 96], strides = [1, 1]} : vector<8x128xf32> to vector<8x96xf32>
    %239 = arith.negf %238 : vector<8x96xf32>
    %240 = math.exp %239 : vector<8x96xf32>
    %cst_61 = arith.constant 1.000000e+00 : f32
    %241 = vector.broadcast %cst_61 : f32 to vector<8x96xf32>
    %242 = arith.addf %241, %240 : vector<8x96xf32>
    %243 = arith.divf %241, %242 : vector<8x96xf32>
    %244 = vector.extract_strided_slice %237 {offsets = [0, 96], sizes = [8, 32], strides = [1, 1]} : vector<8x128xf32> to vector<8x32xf32>
    %245 = math.tanh %244 : vector<8x32xf32>
    %246 = vector.extract_strided_slice %243 {offsets = [0, 0], sizes = [8, 32], strides = [1, 1]} : vector<8x96xf32> to vector<8x32xf32>
    %247 = vector.extract_strided_slice %243 {offsets = [0, 32], sizes = [8, 32], strides = [1, 1]} : vector<8x96xf32> to vector<8x32xf32>
    %248 = vector.extract_strided_slice %243 {offsets = [0, 64], sizes = [8, 32], strides = [1, 1]} : vector<8x96xf32> to vector<8x32xf32>
    %249 = arith.mulf %247, %199 : vector<8x32xf32>
    %250 = arith.mulf %246, %245 : vector<8x32xf32>
    %251 = arith.addf %249, %250 : vector<8x32xf32>
    %252 = math.tanh %251 : vector<8x32xf32>
    %253 = arith.mulf %248, %252 : vector<8x32xf32>
    %cst_62 = arith.constant dense<0.000000e+00> : vector<8x2xf32>
    %254 = tpu.matmul %253, %21, %cst_62 {dimension_numbers = #tpu.dot_dimension_numbers<[1], [0], [0], [1], [0, 0, 1, 1], [], []>} : vector<8x32xf32>, vector<32x2xf32>, vector<8x2xf32> -> vector<8x2xf32>
    %255 = vector.extract_strided_slice %254 {offsets = [0, 0], sizes = [8, 1], strides = [1, 1]} : vector<8x2xf32> to vector<8x1xf32>
    %256 = vector.extract_strided_slice %254 {offsets = [0, 1], sizes = [8, 1], strides = [1, 1]} : vector<8x2xf32> to vector<8x1xf32>
    %257 = arith.addf %255, %235 : vector<8x1xf32>
    %258 = arith.addf %257, %223 : vector<8x1xf32>
    %259 = vector.shape_cast %258 : vector<8x1xf32> to vector<1x8x1xf32>
    %cst_63 = arith.constant dense<0xFF800000> : vector<1xf32>
    %260 = vector.multi_reduction <maximumf>, %259, %cst_63 [1, 2] : vector<1x8x1xf32> to vector<1xf32>
    %261 = vector.shape_cast %260 : vector<1xf32> to vector<1x1x1xf32>
    %262 = vector.extract %261[0, 0, 0] : f32 from vector<1x1x1xf32>
    %263 = vector.broadcast %262 : f32 to vector<1x1xf32>
    %264 = vector.broadcast %263 : vector<1x1xf32> to vector<8x1xf32>
    %265 = arith.subf %258, %264 : vector<8x1xf32>
    %266 = math.exp %265 : vector<8x1xf32>
    %cst_64 = arith.constant dense<0.000000e+00> : vector<2x1xf32>
    %267 = tpu.matmul %18, %266, %cst_64 {dimension_numbers = #tpu.dot_dimension_numbers<[1], [0], [0], [1], [0, 0, 1, 1], [], []>} : vector<2x8xf32>, vector<8x1xf32>, vector<2x1xf32> -> vector<2x1xf32>
    %268 = math.log %267 : vector<2x1xf32>
    %269 = vector.broadcast %263 : vector<1x1xf32> to vector<2x1xf32>
    %270 = arith.addf %269, %268 : vector<2x1xf32>
    %271 = tpu.reciprocal %267 {approx = true} : vector<2x1xf32> -> vector<2x1xf32>
    %272 = tpu.concatenate %270, %271 in 1 : vector<2x1xf32>, vector<2x1xf32> -> vector<2x2xf32>
    %cst_65 = arith.constant dense<0.000000e+00> : vector<8x2xf32>
    %273 = tpu.matmul %19, %272, %cst_65 {dimension_numbers = #tpu.dot_dimension_numbers<[1], [0], [0], [1], [0, 0, 1, 1], [], []>} : vector<8x2xf32>, vector<2x2xf32>, vector<8x2xf32> -> vector<8x2xf32>
    %274 = vector.extract_strided_slice %273 {offsets = [0, 0], sizes = [8, 1], strides = [1, 1]} : vector<8x2xf32> to vector<8x1xf32>
    %275 = arith.subf %258, %274 : vector<8x1xf32>
    %276 = vector.extract_strided_slice %273 {offsets = [0, 1], sizes = [8, 1], strides = [1, 1]} : vector<8x2xf32> to vector<8x1xf32>
    %277 = arith.mulf %266, %276 : vector<8x1xf32>
    %278 = arith.mulf %277, %256 : vector<8x1xf32>
    %cst_66 = arith.constant dense<0.000000e+00> : vector<2x1xf32>
    %279 = tpu.matmul %18, %278, %cst_66 {dimension_numbers = #tpu.dot_dimension_numbers<[1], [0], [0], [1], [0, 0, 1, 1], [], []>} : vector<2x8xf32>, vector<8x1xf32>, vector<2x1xf32> -> vector<2x1xf32>
    %280 = vector.broadcast %22 : vector<1x1xf32> to vector<2x1xf32>
    %281 = arith.addf %279, %280 : vector<2x1xf32>
    %282 = math.tanh %281 : vector<2x1xf32>
    %283 = vector.broadcast %22 : vector<1x1xf32> to vector<8x1xf32>
    %284 = arith.addf %256, %283 : vector<8x1xf32>
    %285 = math.tanh %284 : vector<8x1xf32>
    %286 = vector.extract_strided_slice %12 {offsets = [40, 0], sizes = [8, 128], strides = [1, 1]} : vector<64x128xf32> to vector<8x128xf32>
    %287 = vector.extract_strided_slice %17 {offsets = [40, 0], sizes = [8, 1], strides = [1, 1]} : vector<64x1xf32> to vector<8x1xf32>
    %cst_67 = arith.constant dense<0.000000e+00> : vector<8x128xf32>
    %288 = tpu.matmul %253, %20, %cst_67 {dimension_numbers = #tpu.dot_dimension_numbers<[1], [0], [0], [1], [0, 0, 1, 1], [], []>} : vector<8x32xf32>, vector<32x128xf32>, vector<8x128xf32> -> vector<8x128xf32>
    %289 = arith.addf %286, %288 : vector<8x128xf32>
    %290 = vector.extract_strided_slice %289 {offsets = [0, 0], sizes = [8, 96], strides = [1, 1]} : vector<8x128xf32> to vector<8x96xf32>
    %291 = arith.negf %290 : vector<8x96xf32>
    %292 = math.exp %291 : vector<8x96xf32>
    %cst_68 = arith.constant 1.000000e+00 : f32
    %293 = vector.broadcast %cst_68 : f32 to vector<8x96xf32>
    %294 = arith.addf %293, %292 : vector<8x96xf32>
    %295 = arith.divf %293, %294 : vector<8x96xf32>
    %296 = vector.extract_strided_slice %289 {offsets = [0, 96], sizes = [8, 32], strides = [1, 1]} : vector<8x128xf32> to vector<8x32xf32>
    %297 = math.tanh %296 : vector<8x32xf32>
    %298 = vector.extract_strided_slice %295 {offsets = [0, 0], sizes = [8, 32], strides = [1, 1]} : vector<8x96xf32> to vector<8x32xf32>
    %299 = vector.extract_strided_slice %295 {offsets = [0, 32], sizes = [8, 32], strides = [1, 1]} : vector<8x96xf32> to vector<8x32xf32>
    %300 = vector.extract_strided_slice %295 {offsets = [0, 64], sizes = [8, 32], strides = [1, 1]} : vector<8x96xf32> to vector<8x32xf32>
    %301 = arith.mulf %299, %251 : vector<8x32xf32>
    %302 = arith.mulf %298, %297 : vector<8x32xf32>
    %303 = arith.addf %301, %302 : vector<8x32xf32>
    %304 = math.tanh %303 : vector<8x32xf32>
    %305 = arith.mulf %300, %304 : vector<8x32xf32>
    %cst_69 = arith.constant dense<0.000000e+00> : vector<8x2xf32>
    %306 = tpu.matmul %305, %21, %cst_69 {dimension_numbers = #tpu.dot_dimension_numbers<[1], [0], [0], [1], [0, 0, 1, 1], [], []>} : vector<8x32xf32>, vector<32x2xf32>, vector<8x2xf32> -> vector<8x2xf32>
    %307 = vector.extract_strided_slice %306 {offsets = [0, 0], sizes = [8, 1], strides = [1, 1]} : vector<8x2xf32> to vector<8x1xf32>
    %308 = vector.extract_strided_slice %306 {offsets = [0, 1], sizes = [8, 1], strides = [1, 1]} : vector<8x2xf32> to vector<8x1xf32>
    %309 = arith.addf %307, %287 : vector<8x1xf32>
    %310 = arith.addf %309, %275 : vector<8x1xf32>
    %311 = vector.shape_cast %310 : vector<8x1xf32> to vector<1x8x1xf32>
    %cst_70 = arith.constant dense<0xFF800000> : vector<1xf32>
    %312 = vector.multi_reduction <maximumf>, %311, %cst_70 [1, 2] : vector<1x8x1xf32> to vector<1xf32>
    %313 = vector.shape_cast %312 : vector<1xf32> to vector<1x1x1xf32>
    %314 = vector.extract %313[0, 0, 0] : f32 from vector<1x1x1xf32>
    %315 = vector.broadcast %314 : f32 to vector<1x1xf32>
    %316 = vector.broadcast %315 : vector<1x1xf32> to vector<8x1xf32>
    %317 = arith.subf %310, %316 : vector<8x1xf32>
    %318 = math.exp %317 : vector<8x1xf32>
    %cst_71 = arith.constant dense<0.000000e+00> : vector<2x1xf32>
    %319 = tpu.matmul %18, %318, %cst_71 {dimension_numbers = #tpu.dot_dimension_numbers<[1], [0], [0], [1], [0, 0, 1, 1], [], []>} : vector<2x8xf32>, vector<8x1xf32>, vector<2x1xf32> -> vector<2x1xf32>
    %320 = math.log %319 : vector<2x1xf32>
    %321 = vector.broadcast %315 : vector<1x1xf32> to vector<2x1xf32>
    %322 = arith.addf %321, %320 : vector<2x1xf32>
    %323 = tpu.reciprocal %319 {approx = true} : vector<2x1xf32> -> vector<2x1xf32>
    %324 = tpu.concatenate %322, %323 in 1 : vector<2x1xf32>, vector<2x1xf32> -> vector<2x2xf32>
    %cst_72 = arith.constant dense<0.000000e+00> : vector<8x2xf32>
    %325 = tpu.matmul %19, %324, %cst_72 {dimension_numbers = #tpu.dot_dimension_numbers<[1], [0], [0], [1], [0, 0, 1, 1], [], []>} : vector<8x2xf32>, vector<2x2xf32>, vector<8x2xf32> -> vector<8x2xf32>
    %326 = vector.extract_strided_slice %325 {offsets = [0, 0], sizes = [8, 1], strides = [1, 1]} : vector<8x2xf32> to vector<8x1xf32>
    %327 = arith.subf %310, %326 : vector<8x1xf32>
    %328 = vector.extract_strided_slice %325 {offsets = [0, 1], sizes = [8, 1], strides = [1, 1]} : vector<8x2xf32> to vector<8x1xf32>
    %329 = arith.mulf %318, %328 : vector<8x1xf32>
    %330 = arith.mulf %329, %308 : vector<8x1xf32>
    %cst_73 = arith.constant dense<0.000000e+00> : vector<2x1xf32>
    %331 = tpu.matmul %18, %330, %cst_73 {dimension_numbers = #tpu.dot_dimension_numbers<[1], [0], [0], [1], [0, 0, 1, 1], [], []>} : vector<2x8xf32>, vector<8x1xf32>, vector<2x1xf32> -> vector<2x1xf32>
    %332 = vector.broadcast %22 : vector<1x1xf32> to vector<2x1xf32>
    %333 = arith.addf %331, %332 : vector<2x1xf32>
    %334 = math.tanh %333 : vector<2x1xf32>
    %335 = vector.broadcast %22 : vector<1x1xf32> to vector<8x1xf32>
    %336 = arith.addf %308, %335 : vector<8x1xf32>
    %337 = math.tanh %336 : vector<8x1xf32>
    %338 = vector.extract_strided_slice %12 {offsets = [48, 0], sizes = [8, 128], strides = [1, 1]} : vector<64x128xf32> to vector<8x128xf32>
    %339 = vector.extract_strided_slice %17 {offsets = [48, 0], sizes = [8, 1], strides = [1, 1]} : vector<64x1xf32> to vector<8x1xf32>
    %cst_74 = arith.constant dense<0.000000e+00> : vector<8x128xf32>
    %340 = tpu.matmul %305, %20, %cst_74 {dimension_numbers = #tpu.dot_dimension_numbers<[1], [0], [0], [1], [0, 0, 1, 1], [], []>} : vector<8x32xf32>, vector<32x128xf32>, vector<8x128xf32> -> vector<8x128xf32>
    %341 = arith.addf %338, %340 : vector<8x128xf32>
    %342 = vector.extract_strided_slice %341 {offsets = [0, 0], sizes = [8, 96], strides = [1, 1]} : vector<8x128xf32> to vector<8x96xf32>
    %343 = arith.negf %342 : vector<8x96xf32>
    %344 = math.exp %343 : vector<8x96xf32>
    %cst_75 = arith.constant 1.000000e+00 : f32
    %345 = vector.broadcast %cst_75 : f32 to vector<8x96xf32>
    %346 = arith.addf %345, %344 : vector<8x96xf32>
    %347 = arith.divf %345, %346 : vector<8x96xf32>
    %348 = vector.extract_strided_slice %341 {offsets = [0, 96], sizes = [8, 32], strides = [1, 1]} : vector<8x128xf32> to vector<8x32xf32>
    %349 = math.tanh %348 : vector<8x32xf32>
    %350 = vector.extract_strided_slice %347 {offsets = [0, 0], sizes = [8, 32], strides = [1, 1]} : vector<8x96xf32> to vector<8x32xf32>
    %351 = vector.extract_strided_slice %347 {offsets = [0, 32], sizes = [8, 32], strides = [1, 1]} : vector<8x96xf32> to vector<8x32xf32>
    %352 = vector.extract_strided_slice %347 {offsets = [0, 64], sizes = [8, 32], strides = [1, 1]} : vector<8x96xf32> to vector<8x32xf32>
    %353 = arith.mulf %351, %303 : vector<8x32xf32>
    %354 = arith.mulf %350, %349 : vector<8x32xf32>
    %355 = arith.addf %353, %354 : vector<8x32xf32>
    %356 = math.tanh %355 : vector<8x32xf32>
    %357 = arith.mulf %352, %356 : vector<8x32xf32>
    %cst_76 = arith.constant dense<0.000000e+00> : vector<8x2xf32>
    %358 = tpu.matmul %357, %21, %cst_76 {dimension_numbers = #tpu.dot_dimension_numbers<[1], [0], [0], [1], [0, 0, 1, 1], [], []>} : vector<8x32xf32>, vector<32x2xf32>, vector<8x2xf32> -> vector<8x2xf32>
    %359 = vector.extract_strided_slice %358 {offsets = [0, 0], sizes = [8, 1], strides = [1, 1]} : vector<8x2xf32> to vector<8x1xf32>
    %360 = vector.extract_strided_slice %358 {offsets = [0, 1], sizes = [8, 1], strides = [1, 1]} : vector<8x2xf32> to vector<8x1xf32>
    %361 = arith.addf %359, %339 : vector<8x1xf32>
    %362 = arith.addf %361, %327 : vector<8x1xf32>
    %363 = vector.shape_cast %362 : vector<8x1xf32> to vector<1x8x1xf32>
    %cst_77 = arith.constant dense<0xFF800000> : vector<1xf32>
    %364 = vector.multi_reduction <maximumf>, %363, %cst_77 [1, 2] : vector<1x8x1xf32> to vector<1xf32>
    %365 = vector.shape_cast %364 : vector<1xf32> to vector<1x1x1xf32>
    %366 = vector.extract %365[0, 0, 0] : f32 from vector<1x1x1xf32>
    %367 = vector.broadcast %366 : f32 to vector<1x1xf32>
    %368 = vector.broadcast %367 : vector<1x1xf32> to vector<8x1xf32>
    %369 = arith.subf %362, %368 : vector<8x1xf32>
    %370 = math.exp %369 : vector<8x1xf32>
    %cst_78 = arith.constant dense<0.000000e+00> : vector<2x1xf32>
    %371 = tpu.matmul %18, %370, %cst_78 {dimension_numbers = #tpu.dot_dimension_numbers<[1], [0], [0], [1], [0, 0, 1, 1], [], []>} : vector<2x8xf32>, vector<8x1xf32>, vector<2x1xf32> -> vector<2x1xf32>
    %372 = math.log %371 : vector<2x1xf32>
    %373 = vector.broadcast %367 : vector<1x1xf32> to vector<2x1xf32>
    %374 = arith.addf %373, %372 : vector<2x1xf32>
    %375 = tpu.reciprocal %371 {approx = true} : vector<2x1xf32> -> vector<2x1xf32>
    %376 = tpu.concatenate %374, %375 in 1 : vector<2x1xf32>, vector<2x1xf32> -> vector<2x2xf32>
    %cst_79 = arith.constant dense<0.000000e+00> : vector<8x2xf32>
    %377 = tpu.matmul %19, %376, %cst_79 {dimension_numbers = #tpu.dot_dimension_numbers<[1], [0], [0], [1], [0, 0, 1, 1], [], []>} : vector<8x2xf32>, vector<2x2xf32>, vector<8x2xf32> -> vector<8x2xf32>
    %378 = vector.extract_strided_slice %377 {offsets = [0, 0], sizes = [8, 1], strides = [1, 1]} : vector<8x2xf32> to vector<8x1xf32>
    %379 = arith.subf %362, %378 : vector<8x1xf32>
    %380 = vector.extract_strided_slice %377 {offsets = [0, 1], sizes = [8, 1], strides = [1, 1]} : vector<8x2xf32> to vector<8x1xf32>
    %381 = arith.mulf %370, %380 : vector<8x1xf32>
    %382 = arith.mulf %381, %360 : vector<8x1xf32>
    %cst_80 = arith.constant dense<0.000000e+00> : vector<2x1xf32>
    %383 = tpu.matmul %18, %382, %cst_80 {dimension_numbers = #tpu.dot_dimension_numbers<[1], [0], [0], [1], [0, 0, 1, 1], [], []>} : vector<2x8xf32>, vector<8x1xf32>, vector<2x1xf32> -> vector<2x1xf32>
    %384 = vector.broadcast %22 : vector<1x1xf32> to vector<2x1xf32>
    %385 = arith.addf %383, %384 : vector<2x1xf32>
    %386 = math.tanh %385 : vector<2x1xf32>
    %387 = vector.broadcast %22 : vector<1x1xf32> to vector<8x1xf32>
    %388 = arith.addf %360, %387 : vector<8x1xf32>
    %389 = math.tanh %388 : vector<8x1xf32>
    %390 = vector.extract_strided_slice %12 {offsets = [56, 0], sizes = [8, 128], strides = [1, 1]} : vector<64x128xf32> to vector<8x128xf32>
    %391 = vector.extract_strided_slice %17 {offsets = [56, 0], sizes = [8, 1], strides = [1, 1]} : vector<64x1xf32> to vector<8x1xf32>
    %cst_81 = arith.constant dense<0.000000e+00> : vector<8x128xf32>
    %392 = tpu.matmul %357, %20, %cst_81 {dimension_numbers = #tpu.dot_dimension_numbers<[1], [0], [0], [1], [0, 0, 1, 1], [], []>} : vector<8x32xf32>, vector<32x128xf32>, vector<8x128xf32> -> vector<8x128xf32>
    %393 = arith.addf %390, %392 : vector<8x128xf32>
    %394 = vector.extract_strided_slice %393 {offsets = [0, 0], sizes = [8, 96], strides = [1, 1]} : vector<8x128xf32> to vector<8x96xf32>
    %395 = arith.negf %394 : vector<8x96xf32>
    %396 = math.exp %395 : vector<8x96xf32>
    %cst_82 = arith.constant 1.000000e+00 : f32
    %397 = vector.broadcast %cst_82 : f32 to vector<8x96xf32>
    %398 = arith.addf %397, %396 : vector<8x96xf32>
    %399 = arith.divf %397, %398 : vector<8x96xf32>
    %400 = vector.extract_strided_slice %393 {offsets = [0, 96], sizes = [8, 32], strides = [1, 1]} : vector<8x128xf32> to vector<8x32xf32>
    %401 = math.tanh %400 : vector<8x32xf32>
    %402 = vector.extract_strided_slice %399 {offsets = [0, 0], sizes = [8, 32], strides = [1, 1]} : vector<8x96xf32> to vector<8x32xf32>
    %403 = vector.extract_strided_slice %399 {offsets = [0, 32], sizes = [8, 32], strides = [1, 1]} : vector<8x96xf32> to vector<8x32xf32>
    %404 = vector.extract_strided_slice %399 {offsets = [0, 64], sizes = [8, 32], strides = [1, 1]} : vector<8x96xf32> to vector<8x32xf32>
    %405 = arith.mulf %403, %355 : vector<8x32xf32>
    %406 = arith.mulf %402, %401 : vector<8x32xf32>
    %407 = arith.addf %405, %406 : vector<8x32xf32>
    %408 = math.tanh %407 : vector<8x32xf32>
    %409 = arith.mulf %404, %408 : vector<8x32xf32>
    %cst_83 = arith.constant dense<0.000000e+00> : vector<8x2xf32>
    %410 = tpu.matmul %409, %21, %cst_83 {dimension_numbers = #tpu.dot_dimension_numbers<[1], [0], [0], [1], [0, 0, 1, 1], [], []>} : vector<8x32xf32>, vector<32x2xf32>, vector<8x2xf32> -> vector<8x2xf32>
    %411 = vector.extract_strided_slice %410 {offsets = [0, 0], sizes = [8, 1], strides = [1, 1]} : vector<8x2xf32> to vector<8x1xf32>
    %412 = vector.extract_strided_slice %410 {offsets = [0, 1], sizes = [8, 1], strides = [1, 1]} : vector<8x2xf32> to vector<8x1xf32>
    %413 = arith.addf %411, %391 : vector<8x1xf32>
    %414 = arith.addf %413, %379 : vector<8x1xf32>
    %415 = vector.shape_cast %414 : vector<8x1xf32> to vector<1x8x1xf32>
    %cst_84 = arith.constant dense<0xFF800000> : vector<1xf32>
    %416 = vector.multi_reduction <maximumf>, %415, %cst_84 [1, 2] : vector<1x8x1xf32> to vector<1xf32>
    %417 = vector.shape_cast %416 : vector<1xf32> to vector<1x1x1xf32>
    %418 = vector.extract %417[0, 0, 0] : f32 from vector<1x1x1xf32>
    %419 = vector.broadcast %418 : f32 to vector<1x1xf32>
    %420 = vector.broadcast %419 : vector<1x1xf32> to vector<8x1xf32>
    %421 = arith.subf %414, %420 : vector<8x1xf32>
    %422 = math.exp %421 : vector<8x1xf32>
    %cst_85 = arith.constant dense<0.000000e+00> : vector<2x1xf32>
    %423 = tpu.matmul %18, %422, %cst_85 {dimension_numbers = #tpu.dot_dimension_numbers<[1], [0], [0], [1], [0, 0, 1, 1], [], []>} : vector<2x8xf32>, vector<8x1xf32>, vector<2x1xf32> -> vector<2x1xf32>
    %424 = math.log %423 : vector<2x1xf32>
    %425 = vector.broadcast %419 : vector<1x1xf32> to vector<2x1xf32>
    %426 = arith.addf %425, %424 : vector<2x1xf32>
    %427 = tpu.reciprocal %423 {approx = true} : vector<2x1xf32> -> vector<2x1xf32>
    %428 = tpu.concatenate %426, %427 in 1 : vector<2x1xf32>, vector<2x1xf32> -> vector<2x2xf32>
    %cst_86 = arith.constant dense<0.000000e+00> : vector<8x2xf32>
    %429 = tpu.matmul %19, %428, %cst_86 {dimension_numbers = #tpu.dot_dimension_numbers<[1], [0], [0], [1], [0, 0, 1, 1], [], []>} : vector<8x2xf32>, vector<2x2xf32>, vector<8x2xf32> -> vector<8x2xf32>
    %430 = vector.extract_strided_slice %429 {offsets = [0, 1], sizes = [8, 1], strides = [1, 1]} : vector<8x2xf32> to vector<8x1xf32>
    %431 = arith.mulf %422, %430 : vector<8x1xf32>
    %432 = arith.mulf %431, %412 : vector<8x1xf32>
    %cst_87 = arith.constant dense<0.000000e+00> : vector<2x1xf32>
    %433 = tpu.matmul %18, %432, %cst_87 {dimension_numbers = #tpu.dot_dimension_numbers<[1], [0], [0], [1], [0, 0, 1, 1], [], []>} : vector<2x8xf32>, vector<8x1xf32>, vector<2x1xf32> -> vector<2x1xf32>
    %434 = vector.broadcast %22 : vector<1x1xf32> to vector<2x1xf32>
    %435 = arith.addf %433, %434 : vector<2x1xf32>
    %436 = math.tanh %435 : vector<2x1xf32>
    %437 = vector.broadcast %22 : vector<1x1xf32> to vector<8x1xf32>
    %438 = arith.addf %412, %437 : vector<8x1xf32>
    %439 = math.tanh %438 : vector<8x1xf32>
    %440 = tpu.concatenate %74, %126, %178, %230, %282, %334, %386, %436 in 1 : vector<2x1xf32>, vector<2x1xf32>, vector<2x1xf32>, vector<2x1xf32>, vector<2x1xf32>, vector<2x1xf32>, vector<2x1xf32>, vector<2x1xf32> -> vector<2x8xf32>
    %c0_88 = arith.constant 0 : index
    %c0_89 = arith.constant 0 : index
    %441 = vector.load %arg16[%c0_88, %c0_89] : memref<2x8xf32, #tpu.memory_space<vmem>>, vector<2x8xf32>
    tpu.vector_store %arg16[%c0_88, %c0_89], %440 {strides = array<i32>} : memref<2x8xf32, #tpu.memory_space<vmem>>, vector<2x8xf32>,
    %442 = tpu.concatenate %77, %129, %181, %233, %285, %337, %389, %439 in 1 : vector<8x1xf32>, vector<8x1xf32>, vector<8x1xf32>, vector<8x1xf32>, vector<8x1xf32>, vector<8x1xf32>, vector<8x1xf32>, vector<8x1xf32> -> vector<8x8xf32>
    %c0_90 = arith.constant 0 : index
    %c0_91 = arith.constant 0 : index
    %443 = vector.load %arg17[%c0_90, %c0_91] : memref<8x8xf32, #tpu.memory_space<vmem>>, vector<8x8xf32>
    tpu.vector_store %arg17[%c0_90, %c0_91], %442 {strides = array<i32>} : memref<8x8xf32, #tpu.memory_space<vmem>>, vector<8x8xf32>,
    return
  }
  func.func @transform_0(%arg0: i32) -> (i32, i32) {
    %c0_i32 = arith.constant 0 : i32
    %c0_i32_0 = arith.constant 0 : i32
    %c0_i32_1 = arith.constant 0 : i32
    return %c0_i32, %c0_i32_0 : i32, i32
  }
  func.func @transform_1(%arg0: i32) -> (i32, i32) {
    %c0_i32 = arith.constant 0 : i32
    %c0_i32_0 = arith.constant 0 : i32
    %c0_i32_1 = arith.constant 0 : i32
    return %c0_i32, %c0_i32_0 : i32, i32
  }
  func.func @transform_2(%arg0: i32) -> (i32, i32) {
    %c0_i32 = arith.constant 0 : i32
    %c0_i32_0 = arith.constant 0 : i32
    %c0_i32_1 = arith.constant 0 : i32
    return %c0_i32, %c0_i32_0 : i32, i32
  }
  func.func @transform_3(%arg0: i32) -> (i32, i32) {
    %c0_i32 = arith.constant 0 : i32
    %c0_i32_0 = arith.constant 0 : i32
    %c0_i32_1 = arith.constant 0 : i32
    return %c0_i32, %c0_i32_0 : i32, i32
  }
  func.func @transform_4(%arg0: i32) -> (i32, i32) {
    %c0_i32 = arith.constant 0 : i32
    %c0_i32_0 = arith.constant 0 : i32
    %c0_i32_1 = arith.constant 0 : i32
    return %c0_i32, %c0_i32_0 : i32, i32
  }
  func.func @transform_5(%arg0: i32) -> (i32, i32) {
    %c0_i32 = arith.constant 0 : i32
    %c0_i32_0 = arith.constant 0 : i32
    %c0_i32_1 = arith.constant 0 : i32
    return %c0_i32, %c0_i32_0 : i32, i32
  }
  func.func @transform_6(%arg0: i32) -> (i32, i32) {
    %c0_i32 = arith.constant 0 : i32
    %c0_i32_0 = arith.constant 0 : i32
    %c0_i32_1 = arith.constant 0 : i32
    return %c0_i32, %c0_i32_0 : i32, i32
  }
  func.func @transform_7(%arg0: i32) -> (i32, i32) {
    %c0_i32 = arith.constant 0 : i32
    %c0_i32_0 = arith.constant 0 : i32
    %c0_i32_1 = arith.constant 0 : i32
    return %c0_i32, %c0_i32_0 : i32, i32
  }
  func.func @transform_8(%arg0: i32) -> (i32, i32) {
    %c0_i32 = arith.constant 0 : i32
    %c0_i32_0 = arith.constant 0 : i32
    %c0_i32_1 = arith.constant 0 : i32
    return %c0_i32, %c0_i32_0 : i32, i32
  }
  func.func @transform_9(%arg0: i32) -> (i32, i32) {
    %c0_i32 = arith.constant 0 : i32
    %c0_i32_0 = arith.constant 0 : i32
    %c0_i32_1 = arith.constant 0 : i32
    return %c0_i32, %c0_i32_0 : i32, i32
  }
  func.func @transform_10(%arg0: i32) -> (i32, i32) {
    %c0_i32 = arith.constant 0 : i32
    %c0_i32_0 = arith.constant 0 : i32
    %c0_i32_1 = arith.constant 0 : i32
    return %c0_i32, %c0_i32_0 : i32, i32
  }
  func.func @transform_11(%arg0: i32) -> (i32, i32) {
    %c0_i32 = arith.constant 0 : i32
    %c0_i32_0 = arith.constant 0 : i32
    %c0_i32_1 = arith.constant 0 : i32
    return %c0_i32, %c0_i32_0 : i32, i32
  }
  func.func @transform_12(%arg0: i32) -> (i32, i32) {
    %c0_i32 = arith.constant 0 : i32
    %c0_i32_0 = arith.constant 0 : i32
    %c0_i32_1 = arith.constant 0 : i32
    return %c0_i32, %c0_i32_0 : i32, i32
  }
  func.func @transform_13(%arg0: i32) -> (i32, i32) {
    %c0_i32 = arith.constant 0 : i32
    %c0_i32_0 = arith.constant 0 : i32
    %c0_i32_1 = arith.constant 0 : i32
    return %c0_i32, %c0_i32_0 : i32, i32
  }
  func.func @transform_14(%arg0: i32) -> (i32, i32) {
    %c0_i32 = arith.constant 0 : i32
    %c0_i32_0 = arith.constant 0 : i32
    %c0_i32_1 = arith.constant 0 : i32
    return %c0_i32, %c0_i32_0 : i32, i32
  }
  func.func @transform_15(%arg0: i32) -> (i32, i32) {
    %c0_i32 = arith.constant 0 : i32
    %c0_i32_0 = arith.constant 0 : i32
    %c0_i32_1 = arith.constant 0 : i32
    return %c0_i32, %c0_i32_0 : i32, i32
  }
  func.func @transform_16(%arg0: i32) -> (i32, i32) {
    %c0_i32 = arith.constant 0 : i32
    %c0_i32_0 = arith.constant 0 : i32
    %c0_i32_1 = arith.constant 0 : i32
    return %c0_i32, %c0_i32_0 : i32, i32
  }
}

</mosaic_0001>

<bundles_post_ra>
// kernel: tracker_forward.1
= control target key start
LH: loop header
LB: loop body
LE: loop exit
PB: predicated region body
PF: predicated region fallthrough
CT: control target
= control target key end

     0   :  { %s5689_s0 = inlined_call_operand.vmem [shape: f32[64,40], index: 0, kind: input, shape index: {}]   ;;  %s5690_s1 = inlined_call_operand.vmem [shape: f32[40,32], index: 1, kind: input, shape index: {}]   ;;  %s5691_s2 = inlined_call_operand.vmem [shape: f32[1,32], index: 2, kind: input, shape index: {}]   ;;  %s5692_s3 = inlined_call_operand.vmem [shape: f32[32,128], index: 3, kind: input, shape index: {}]   ;;  %s5693_s4 = inlined_call_operand.vmem [shape: f32[1,128], index: 4, kind: input, shape index: {}]   ;;  %s5694_s5 = inlined_call_operand.vmem [shape: f32[32,128], index: 5, kind: input, shape index: {}]   ;;  %s5695_s6 = inlined_call_operand.vmem [shape: f32[32,1], index: 6, kind: input, shape index: {}]   ;;  %s5696_s7 = inlined_call_operand.<no memory space> [shape: f32[1,1], index: 7, kind: input, shape index: {}]   ;;  %s5697_s8 = inlined_call_operand.vmem [shape: f32[32,2], index: 8, kind: input, shape index: {}]   ;;  %s5698_s10 = inlined_call_operand.vmem [shape: f32[2,8], index: 10, kind: input, shape index: {}]   ;;  %s5699_s11 = inlined_call_operand.vmem [shape: f32[8,2], index: 11, kind: input, shape index: {}]   ;;  %s5700_s12 = inlined_call_operand.vmem [shape: f32[8,32], index: 12, kind: input, shape index: {}]   ;;  %s5701_s13 = inlined_call_operand.vmem [shape: f32[8,32], index: 13, kind: input, shape index: {}]   ;;  %s5702_s14 = inlined_call_operand.vmem [shape: f32[8,1], index: 14, kind: input, shape index: {}]   ;;  %s5703_s15 = inlined_call_operand.hbm [shape: f32[2,8], index: 15, kind: output, shape index: {0}]   ;;  %s5704_s16 = inlined_call_operand.vmem [shape: f32[8,8], index: 16, kind: output, shape index: {1}]   ;;  %s5705_s9 = inlined_call_operand.<no memory space> [shape: f32[1,1], index: 9, kind: input, shape index: {}]  }
   0x1   :  { %5707 = sst [smem:[#allocation7_spill]] %s5689_s0  ;;  %v22_v0 = vstv %s5696_s7  ;;  %v24_v1 = vstv %s5705_s9 }
   0x2   :  { %23 = vst [vmem:[#allocation2] sm:$0x1] %v22_v0  ;;  %25 = vst [vmem:[#allocation3] sm:$0x1] %v24_v1 }
   0x3   :  { %v65_v2 = vld [vmem:[%s5690_s1] sm:$0xff]  ;;  %v66_v3 = vld [vmem:[%s5690_s1 + $0x8] sm:$0xff]  ;;  %v67_v4 = vld [vmem:[%s5690_s1 + $0x10] sm:$0xff]  ;;  %vm77_vm0 = vcmask 326656   ;;  %s5708_s18 = sld [smem:[#allocation7_spill]] }
   0x4   :  { %v4590_v5 = vpack.c.bf16 %v66_v3, %v65_v2  ;;  %v68_v6 = vld [vmem:[%s5690_s1 + $0x18] sm:$0xff]  ;;  %v215_v9 = vld [vmem:[%s5692_s3] sm:$0xff]  ;;  %v216_v10 = vld [vmem:[%s5692_s3 + $0x8] sm:$0xff] }
   0x5   :  { %v4594_v8 = vpack.c.bf16 %v68_v6, %v67_v4  ;;  %v4598_v11 = vpack.c.bf16 %v216_v10, %v215_v9 }
   0x6   :  { %4591 = vmatprep.subr.bf16.mxu0 %v4590_v5 }
   0x7   :  { %4593 = vmatpush3.bf16.msra.mxu0 %v4590_v5 }
   0x8   :  { %4595 = vmatprep.subr.bf16.mxu0 %v4594_v8 }
   0x9   :  { %v57_v7 = vld [vmem:[%s5708_s18] sm:$0xff] }
   0xa   :  { %4242 = vmatprep.mubr.msk.f32.mxu0 %vm77_vm0, %v57_v7 }
   0xb   :  { %26 = vsyncpa [#allocation5], 0  ;;  %v69_v12 = vld [vmem:[%s5690_s1 + $0x20] sm:$0xff]  ;;  %4599 = vmatprep.subr.bf16.mxu1 %v4598_v11  ;;  %4597 = vmatpush3.bf16.msra.mxu0 %v4594_v8  ;;  %v58_v13 = vld [vmem:[%s5708_s18 + $0x8] sm:$0xff]  ;;  %v4910_v25 = vmov 0.0|0.0   ;;  %vm226_vm1 = vcmask 261120  }
   0xc   :  { %4601 = vmatpush3.bf16.msra.mxu1 %v4598_v11  ;;  %4240 = vmatprep.subr.mxu0 %v69_v12  ;;  %v59_v14 = vld [vmem:[%s5708_s18 + $0x10] sm:$0xff]  ;;  %v60_v15 = vld [vmem:[%s5708_s18 + $0x18] sm:$0xff]  ;;  %v61_v16 = vld [vmem:[%s5708_s18 + $0x20] sm:$0xff]  ;;  %vm4911_vm2 = vmmov 0   ;;  %v4912_v30 = vmov 0.0   ;;  %vm665_vm3 = vcmask 7168  }
   0xd   :  { %v62_v17 = vld [vmem:[%s5708_s18 + $0x28] sm:$0xff]  ;;  %v63_v18 = vld [vmem:[%s5708_s18 + $0x30] sm:$0xff]  ;;  %v64_v19 = vld [vmem:[%s5708_s18 + $0x38] sm:$0xff]  ;;  %vm680_vm4 = vcmask 64512   ;;  %s4915_s17 = smov 1   ;;  %vm767_vm5 = vcmask 1041408  }
   0xe   :  { %v474_v20 = vld [vmem:[%s5694_s5] sm:$0xff]  ;;  %v475_v21 = vld [vmem:[%s5694_s5 + $0x8] sm:$0xff]  ;;  %v217_v23 = vld [vmem:[%s5692_s3 + $0x10] sm:$0xff]  ;;  %vm763_vm6 = vcmask 15360   ;;  %s4916_s21 = smov 127   ;;  %s4918_s27 = smov 3  }
   0xf   :  { %4241 = vmatpush3.msra.mxu0 %v69_v12  ;;  %v5074_v22 = vpack.c.bf16 %v475_v21, %v474_v20  ;;  %v218_v24 = vld [vmem:[%s5692_s3 + $0x18] sm:$0xff]  ;;  %v476_v27 = vld [vmem:[%s5694_s5 + $0x10] sm:$0xff]  ;;  %v483_v31 = vld [vmem:[%s5700_s12] sm:$0xff]  ;;  %s4914_s3 = smov 64   ;;  %s4919_s28 = smov 4   ;;  %vm3917_vm7 = vcmask 23552  }
  0x10   :  { %4243 = vmatmul.mubr.msk.f32.vlgmr.msra.gmra.mrb[0].mxu0 %vm77_vm0, %v58_v13  ;;  %4614 = vmatprep.subr.bf16.mxu0 %v4910_v25  ;;  %v4602_v26 = vpack.c.bf16 %v218_v24, %v217_v23  ;;  %v477_v28 = vld [vmem:[%s5694_s5 + $0x18] sm:$0xff]  ;;  %v356_v32 = vld [vmem:[%s5695_s6] sm:$0xff]  ;;  %v357_v33 = vld [vmem:[%s5695_s6 + $0x8] sm:$0xff]  ;;  %s4920_s29 = smov 5   ;;  %s4921_s18 = smov 6   ;;  %vm3919_vm8 = vcmask 31744  }
  0x11   :  { %4245 = vmatprep.mubr.msk.f32.mxu0 %vm77_vm0, %v59_v14  ;;  %4616 = vmatpush3.bf16.msra.mxu0 %v5074_v22  ;;  %v5091_v29 = vpack.c.bf16 %v477_v28, %v476_v27  ;;  %v4606_v34 = vpack.c.bf16 %v357_v33, %v356_v32  ;;  %v3983_v35 = vld [vmem:[%s5691_s2] ss:$0 sm:$0xff]  ;;  %v358_v40 = vld [vmem:[%s5695_s6 + $0x10] sm:$0xff]  ;;  %v359_v41 = vld [vmem:[%s5695_s6 + $0x18] sm:$0xff]  ;;  %s4922_s30 = smov 7   ;;  %s4923_s1 = smov [#allocation4]  }
  0x12   :  { %4603 = vmatprep.subr.bf16.mxu1 %v4602_v26  ;;  %4617 = vmatprep.subr.bf16.mxu0 %v4910_v25  ;;  %v4610_v47 = vpack.c.bf16 %v359_v41, %v358_v40  ;;  %v3992_v1 = vld [vmem:[%s5693_s4] ss:$0 sm:$0xff]  ;;  %s4913_s4 = smov 32   ;;  %s3971_s7 = sshll.u32 %s4923_s1, 4  ;;  %vm3921_vm9 = vcmask 39936   ;;  %vm3925_vm10 = vcmask 56320   ;;  %s3972_s7 = int_to_ptr.vmem [resolvable:$true] %s3971_s7 }
  0x13   :  { %4605 = vmatpush3.bf16.msra.mxu1 %v4602_v26  ;;  %v484_v26 = vld [vmem:[%s5701_s13] sm:$0xff]  ;;  %vm3923_vm11 = vcmask 48128   ;;  %vm3927_vm12 = vcmask 58368   ;;  %p4891_p1 = scmp.lt.s32.totalorder %s3972_s7, %s3972_s7 }
  0x14   :  { %4246 = vmatmul.mubr.msk.f32.gmra.mrb[2].mxu0 %vm77_vm0, %v60_v15  ;;  %4607 = vmatprep.subr.bf16.mxu1 %v4606_v34 }
  0x15   :  { %4248 = vmatprep.mubr.msk.f32.mxu0 %vm77_vm0, %v61_v16  ;;  %4619 = vmatpush3.bf16.msra.mxu0 %v5091_v29 }
  0x16   :  { %4620 = vmatprep.subr.bf16.mxu0 %v4910_v25 }
  0x18   :  { %4249 = vmatmul.mubr.msk.f32.gmra.mrb[4].mxu0 %vm77_vm0, %v62_v17 }
  0x19   :  { %4251 = vmatprep.mubr.msk.f32.mxu0 %vm77_vm0, %v63_v18 }
  0x1c   :  { %4252 = vmatmul.mubr.msk.f32.gmra.mrb[6].mxu0 %vm77_vm0, %v64_v19  ;;  %v4001_v19 = vld [vmem:[#allocation2] ss:$0 sm:$0xff] }
  0x1d   :  { %4302 = vmatprep.mubr.msk.f32.mxu0 %vm4911_vm2, %v4912_v30 }
  0x20   :  { %4303 = vmatmul.mubr.msk.f32.vlgmr.msra.gmra.mrb[8].mxu0 %vm226_vm1, %v483_v31 }
  0x21   :  { %4313 = vmatprep.mubr.msk.f32.mxu0 %vm4911_vm2, %v4912_v30 }
  0xe3   :  { %v4244_v36 = vpop.f32.mrb[0].mxu0 }
  0xe4   :  { %v174_v37 = vadd.f32 %v4244_v36, %v3983_v35  ;;  %v168_v38 = vpop.f32.mrb[1].mxu0 }
  0xe5   :  { %v169_v39 = vadd.f32 %v3983_v35, %v168_v38 }
  0xe6   :  { %v208_v44 = vmax.f32 %v174_v37, 0.0 }
  0xe7   :  { %v207_v42 = vmax.f32 %v169_v39, 0.0  ;;  %v4247_v43 = vpop.f32.mrb[2].mxu0 }
  0xe8   :  { %v184_v45 = vadd.f32 %v4247_v43, %v3983_v35  ;;  %v178_v46 = vpop.f32.mrb[3].mxu0 }
  0xe9   :  { %v179_v48 = vadd.f32 %v3983_v35, %v178_v46  ;;  %4262 = vmatprep.mubr.msk.f32.mxu1 %vm226_vm1, %v207_v42 }
  0xea   :  { %v210_v49 = vmax.f32 %v184_v45, 0.0  ;;  %4263 = vmatmul.mubr.msk.f32.vlgmr.msra.gmra.mrb[0].mxu1 %vm226_vm1, %v208_v44 }
  0xeb   :  { %v209_v50 = vmax.f32 %v179_v48, 0.0  ;;  %v4250_v51 = vpop.f32.mrb[4].mxu0  ;;  %4609 = vmatpush3.bf16.msra.mxu1 %v4606_v34 }
  0xec   :  { %v194_v52 = vadd.f32 %v4250_v51, %v3983_v35  ;;  %v188_v53 = vpop.f32.mrb[5].mxu0  ;;  %4611 = vmatprep.subr.bf16.mxu1 %v4610_v47  ;;  %v478_v51 = vld [vmem:[%s5697_s8] sm:$0xff] }
  0xed   :  { %v189_v54 = vadd.f32 %v3983_v35, %v188_v53  ;;  %4265 = vmatprep.mubr.msk.f32.mxu1 %vm226_vm1, %v209_v50  ;;  %v480_v53 = vld [vmem:[%s5697_s8 + $0x10] sm:$0xff] }
  0xee   :  { %v212_v55 = vmax.f32 %v194_v52, 0.0  ;;  %4266 = vmatmul.mubr.msk.f32.gmra.mrb[2].mxu1 %vm226_vm1, %v210_v49  ;;  %v479_v52 = vld [vmem:[%s5697_s8 + $0x8] sm:$0xff] }
  0xef   :  { %v211_v56 = vmax.f32 %v189_v54, 0.0  ;;  %v4253_v57 = vpop.f32.mrb[6].mxu0  ;;  %4613 = vmatpush3.bf16.msra.mxu1 %v4610_v47  ;;  %v5186_v54 = vpack.c.bf16 %v479_v52, %v478_v51 }
  0xf0   :  { %v204_v58 = vadd.f32 %v4253_v57, %v3983_v35  ;;  %v198_v59 = vpop.f32.mrb[7].mxu0  ;;  %4321 = vmatprep.subr.mxu1 %v4912_v30 }
  0xf1   :  { %v199_v60 = vadd.f32 %v3983_v35, %v198_v59  ;;  %4268 = vmatprep.mubr.msk.f32.mxu1 %vm226_vm1, %v211_v56  ;;  %4622 = vmatpush3.bf16.msra.mxu0 %v5186_v54 }
  0xf2   :  { %v214_v61 = vmax.f32 %v204_v58, 0.0  ;;  %4269 = vmatmul.mubr.msk.f32.gmra.mrb[4].mxu1 %vm226_vm1, %v212_v55  ;;  %4623 = vmatprep.subr.bf16.mxu0 %v4910_v25 }
  0xf3   :  { %v213_v62 = vmax.f32 %v199_v60, 0.0  ;;  %v555_v63 = vpop.f32.mrb[8].mxu0 }
  0xf4   :  { %v4304_v0 = vpop.f32.mrb[9].mxu0 }
  0xf5   :  { %4271 = vmatprep.mubr.msk.f32.mxu1 %vm226_vm1, %v213_v62 }
  0xf6   :  { %4272 = vmatmul.mubr.msk.f32.gmra.mrb[6].mxu1 %vm226_vm1, %v214_v61 }
  0xf7   :  { %4282 = vmatprep.mubr.msk.f32.mxu1 %vm226_vm1, %v207_v42 }
  0xfa   :  { %4283 = vmatmul.mubr.msk.f32.vlgmr.msra.gmra.mrb[8].mxu1 %vm226_vm1, %v208_v44 }
  0xfb   :  { %4285 = vmatprep.mubr.msk.f32.mxu1 %vm226_vm1, %v209_v50 }
  0xfe   :  { %4286 = vmatmul.mubr.msk.f32.gmra.mrb[10].mxu1 %vm226_vm1, %v210_v49 }
  0xff   :  { %4288 = vmatprep.mubr.msk.f32.mxu1 %vm226_vm1, %v211_v56 }
 0x102   :  { %4289 = vmatmul.mubr.msk.f32.gmra.mrb[12].mxu1 %vm226_vm1, %v212_v55  ;;  %v481_v55 = vld [vmem:[%s5697_s8 + $0x18] sm:$0xff] }
 0x103   :  { %4291 = vmatprep.mubr.msk.f32.mxu1 %vm226_vm1, %v213_v62  ;;  %v5192_v56 = vpack.c.bf16 %v481_v55, %v480_v53 }
 0x105   :  { %4625 = vmatpush3.bf16.msra.mxu0 %v5192_v56 }
 0x106   :  { %4292 = vmatmul.mubr.msk.f32.gmra.mrb[14].mxu1 %vm226_vm1, %v214_v61  ;;  %4316 = vmatprep.subr.mxu0 %v4912_v30 }
 0x107   :  { %4323 = vmatprep.mubr.msk.f32.mxu1 %vm4911_vm2, %v4912_v30 }
 0x1bd   :  { %v4264_v2 = vpop.f32.mrb[0].mxu1 }
 0x1be   :  { %v5140_v3 = vadd.f32 %v4264_v2, %v3992_v1  ;;  %v317_v4 = vpop.f32.mrb[1].mxu1 }
 0x1bf   :  { %v318_v5 = vadd.f32 %v3992_v1, %v317_v4 }
 0x1c1   :  { %v559_v6 = vadd.f32 %v555_v63, %v318_v5  ;;  %v4267_v7 = vpop.f32.mrb[2].mxu1  ;;  %v485_v63 = vld [vmem:[%s5702_s14] sm:$0xff] }
 0x1c2   :  { %v5142_v8 = vadd.f32 %v4267_v7, %v3992_v1  ;;  %v327_v9 = vpop.f32.mrb[3].mxu1 }
 0x1c3   :  { %4740 = vtanh.f32 %v559_v6  ;;  %v5144_v10 = vadd.f32 %v3992_v1, %v327_v9  ;;  %v4011_v41 = vmul.f32 -1.442695, %v559_v6 }
 0x1c5   :  { %v4270_v11 = vpop.f32.mrb[4].mxu1  ;;  %4742 = vpow2.f32 %v4011_v41  ;;  %v5227_v41 = vld [vmem:[%s5699_s11] sm:$0xff] }
 0x1c6   :  { %v5146_v12 = vadd.f32 %v4270_v11, %v3992_v1  ;;  %v337_v13 = vpop.f32.mrb[5].mxu1 }
 0x1c7   :  { %v5148_v14 = vadd.f32 %v3992_v1, %v337_v13 }
 0x1c9   :  { %v4273_v15 = vpop.f32.mrb[6].mxu1 }
 0x1ca   :  { %v5150_v16 = vadd.f32 %v4273_v15, %v3992_v1  ;;  %v347_v17 = vpop.f32.mrb[7].mxu1 }
 0x1cb   :  { %v5152_v18 = vadd.f32 %v3992_v1, %v347_v17 }
 0x1cd   :  { %v4741_v20 = vpop.eup %4740  ;;  %v4284_v21 = vpop.f32.mrb[8].mxu1 }
 0x1ce   :  { %v5154_v23 = vadd.f32 %v4284_v21, %v4001_v19  ;;  %v433_v24 = vpop.f32.mrb[9].mxu1  ;;  %573 = vrot.lane.b32.xlu0 %v4741_v20, %s4913_s4  ;;  %v5216_v21 = vld [vmem:[%s5698_s10] sm:$0x3] }
 0x1cf   :  { %v4743_v42 = vpop.eup %4742  ;;  %v434_v61 = vadd.f32 %v4001_v19, %v433_v24 }
 0x1d0   :  { %v563_v43 = vadd.f32 1.0, %v4743_v42 }
 0x1d1   :  { %v4287_v27 = vpop.f32.mrb[10].mxu1 }
 0x1d2   :  { %568 = vrot.lane.b32.xlu0 %v484_v26, %s4913_s4  ;;  %v5161_v28 = vadd.f32 %v4287_v27, %v4001_v19  ;;  %v443_v31 = vpop.f32.mrb[11].mxu1  ;;  %4744 = vrcp.f32 %v563_v43 }
 0x1d3   :  { %v5163_v32 = vadd.f32 %v4001_v19, %v443_v31 }
 0x1d5   :  { %v4290_v33 = vpop.f32.mrb[12].mxu1 }
 0x1d6   :  { %v5165_v34 = vadd.f32 %v4290_v33, %v4001_v19  ;;  %v453_v35 = vpop.f32.mrb[13].mxu1 }
 0x1d7   :  { %v5167_v36 = vadd.f32 %v4001_v19, %v453_v35 }
 0x1d9   :  { %v4293_v37 = vpop.f32.mrb[14].mxu1 }
 0x1da   :  { %v5169_v38 = vadd.f32 %v4293_v37, %v4001_v19  ;;  %v463_v39 = vpop.f32.mrb[15].mxu1 }
 0x1db   :  { %v5171_v40 = vadd.f32 %v4001_v19, %v463_v39 }
 0x1dc   :  { %v4745_v44 = vpop.eup %4744 }
 0x240   :  { %v574_v45 = vpop.permute.xlu0 %573 }
 0x241   :  { %v576_v46 = vmul.f32 %v4745_v44, %v574_v45 }
 0x243   :  { %578 = vrot.lane.b32.xlu1 %v576_v46, %s4913_s4 }
 0x244   :  { %v569_v47 = vpop.permute.xlu0 %568 }
 0x245   :  { %v571_v48 = vmul.f32 %v4745_v44, %v569_v47 }
 0x2b5   :  { %v579_v49 = vpop.permute.xlu1 %578 }
 0x2b6   :  { %v5174_v50 = vadd.f32 %v579_v49, %v571_v48 }
 0x2b8   :  { %4746 = vtanh.f32 %v5174_v50 }
 0x2c2   :  { %v4747_v57 = vpop.eup %4746 }
 0x2c3   :  { %584 = vrot.lane.b32.xlu1 %v4747_v57, %s4913_s4 }
 0x335   :  { %v585_v58 = vpop.permute.xlu1 %584 }
 0x336   :  { %v587_v59 = vmul.f32 %v4745_v44, %v585_v58 }
 0x338   :  { %589 = vrot.lane.b32.xlu0 %v587_v59, %s4914_s3 }
 0x3aa   :  { %v590_v60 = vpop.permute.xlu0 %589 }
 0x3ab   :  { %4314 = vmatmul.mubr.msk.f32.vlgmr.msra.gmra.mrb[10].mxu0 %vm226_vm1, %v590_v60 }
 0x3ac   :  { %4318 = vmatprep.mubr.msk.f32.mxu0 %vm4911_vm2, %v4912_v30 }
 0x47e   :  { %v5202_v62 = vpop.f32.mrb[10].mxu0 }
 0x47f   :  { %v663_v0 = vadd.f32 %v5202_v62, %v434_v61  ;;  %v4315_v1 = vpop.f32.mrb[11].mxu0 }
 0x481   :  { %v5208_v2 = vadd.f32 %v663_v0, %v485_v63 }
 0x483   :  { %v666_v4 = vsel %vm665_vm3, %v5208_v2, -inf }
 0x484   :  { %667 = vmax.xlane.f32.xlu1 %v666_v4 }
 0x511   :  { %v668_v5 = vpop.xlane.xlu1 %667 }
 0x512   :  { %v669_v6 = vrot.slane %v668_v5, 4 }
 0x514   :  { %v670_v7 = vmax.f32 %v668_v5, %v669_v6 }
 0x516   :  { %v671_v9 = vrot.slane %v670_v7, 2 }
 0x518   :  { %v672_v11 = vmax.f32 %v670_v7, %v671_v9 }
 0x51a   :  { %v673_v13 = vrot.slane %v672_v11, 1 }
 0x51c   :  { %v674_v15 = vmax.f32 %v672_v11, %v673_v13 }
 0x51e   :  { %4710 = vpush %v674_v15 }
 0x54f   :  { %s4711_s5 = spop %4710 }
 0x550   :  { %v676_v17 = vstv %s4711_s5 }
 0x551   :  { %v677_v19 = vsub.f32 %v5208_v2, %v676_v17 }
 0x553   :  { %v678_v20 = vmul.f32 1.442695, %v677_v19 }
 0x555   :  { %4748 = vpow2.f32 %v678_v20 }
 0x55f   :  { %v4749_v24 = vpop.eup %4748 }
 0x560   :  { %4317 = vmatpush3.msra.mxu0 %v4749_v24 }
 0x561   :  { %4319 = vmatmul.mubr.msk.f32.vlgmr.msra.gmra.mrb[12].mxu0 %vm680_vm4, %v5216_v21  ;;  %4326 = vmatprep.subr.mxu0 %v4912_v30 }
 0x562   :  { %4328 = vmatprep.mubr.msk.f32.mxu0 %vm4911_vm2, %v4912_v30 }
 0x634   :  { %v750_v26 = vpop.f32.mrb[12].mxu0 }
 0x635   :  { %v4320_v27 = vpop.f32.mrb[13].mxu0  ;;  %4750 = vrcp.f32 %v750_v26 }
 0x636   :  { %4752 = vlog2.f32 %v750_v26 }
 0x63f   :  { %v4751_v31 = vpop.eup %4750 }
 0x640   :  { %759 = vrot.lane.b32.xlu0 %v4751_v31, %s4915_s17  ;;  %v4753_v33 = vpop.eup %4752 }
 0x641   :  { %v755_v35 = vmul.f32 0.6931472, %v4753_v33 }
 0x643   :  { %v756_v37 = vadd.f32 %v755_v35, %v676_v17 }
 0x6b2   :  { %v760_v39 = vpop.permute.xlu0 %759 }
 0x6b3   :  { %v762_v42 = vsel %vm665_vm3, %v756_v37, %v760_v39 }
 0x6b4   :  { %4322 = vmatpush3.msk.msra.mxu1 %vm767_vm5, %v762_v42 }
 0x6b5   :  { %4324 = vmatmul.mubr.msk.f32.vlgmr.msra.gmra.mrb[16].mxu1 %vm763_vm6, %v5227_v41  ;;  %4626 = vmatprep.subr.bf16.mxu1 %v4910_v25 }
 0x6b6   :  { %4628 = vmatpush3.bf16.msra.mxu1 %v5074_v22  ;;  %4339 = vmatprep.mubr.msk.f32.mxu1 %vm4911_vm2, %v4912_v30 }
 0x6b7   :  { %4629 = vmatprep.subr.bf16.mxu1 %v4910_v25 }
 0x6ba   :  { %4631 = vmatpush3.bf16.msra.mxu1 %v5091_v29 }
 0x6bb   :  { %4353 = vmatprep.subr.mxu1 %v4912_v30 }
 0x6bd   :  { %4340 = vmatmul.mubr.msk.f32.vlgmr.msra.gmra.mrb[18].mxu1 %vm226_vm1, %v590_v60 }
 0x6be   :  { %4355 = vmatprep.mubr.msk.f32.mxu1 %vm4911_vm2, %v4912_v30 }
 0x788   :  { %v837_v43 = vpop.f32.mrb[16].mxu1 }
 0x789   :  { %v4325_v44 = vpop.f32.mrb[17].mxu1  ;;  %v841_v11 = vsub.f32 %v5208_v2, %v837_v43 }
 0x790   :  { %v1000_v45 = vpop.f32.mrb[18].mxu1 }
 0x791   :  { %v1004_v46 = vadd.f32 %v1000_v45, %v5140_v3  ;;  %v4341_v47 = vpop.f32.mrb[19].mxu1 }
 0x793   :  { %4754 = vtanh.f32 %v1004_v46  ;;  %v4019_v49 = vmul.f32 -1.442695, %v1004_v46 }
 0x795   :  { %4756 = vpow2.f32 %v4019_v49 }
 0x79d   :  { %v4755_v48 = vpop.eup %4754 }
 0x79e   :  { %1014 = vrot.lane.b32.xlu0 %v4755_v48, %s4913_s4 }
 0x79f   :  { %v4757_v51 = vpop.eup %4756 }
 0x7a0   :  { %v1008_v52 = vadd.f32 1.0, %v4757_v51 }
 0x7a2   :  { %4758 = vrcp.f32 %v1008_v52 }
 0x7ac   :  { %v4759_v53 = vpop.eup %4758 }
 0x7ad   :  { %v1012_v58 = vmul.f32 %v4759_v53, %v5174_v50 }
 0x810   :  { %v1015_v55 = vpop.permute.xlu0 %1014 }
 0x811   :  { %v1017_v57 = vmul.f32 %v4759_v53, %v1015_v55 }
 0x813   :  { %1019 = vrot.lane.b32.xlu0 %v1017_v57, %s4913_s4 }
 0x885   :  { %v1020_v59 = vpop.permute.xlu0 %1019 }
 0x886   :  { %v5247_v60 = vadd.f32 %v1020_v59, %v1012_v58 }
 0x888   :  { %4760 = vtanh.f32 %v5247_v60 }
 0x892   :  { %v4761_v3 = vpop.eup %4760 }
 0x893   :  { %1025 = vrot.lane.b32.xlu0 %v4761_v3, %s4913_s4 }
 0x897   :  { %843 = vrot.lane.b32.xlu0 %v837_v43, %s4916_s21 }
 0x89b   :  { %848 = vrot.lane.b32.xlu0 %v5202_v62, %s4916_s21 }
 0x905   :  { %v1026_v61 = vpop.permute.xlu0 %1025 }
 0x906   :  { %v1028_v63 = vmul.f32 %v4759_v53, %v1026_v61 }
 0x908   :  { %1030 = vrot.lane.b32.xlu0 %v1028_v63, %s4914_s3 }
 0x909   :  { %v844_v0 = vpop.permute.xlu0 %843 }
 0x90a   :  { %v846_v50 = vmul.f32 %v4749_v24, %v844_v0 }
 0x90d   :  { %v849_v1 = vpop.permute.xlu0 %848 }
 0x90e   :  { %v851_v4 = vmul.f32 %v849_v1, %v846_v50 }
 0x910   :  { %4327 = vmatpush3.msra.mxu0 %v851_v4 }
 0x911   :  { %4632 = vmatprep.subr.bf16.mxu0 %v4910_v25  ;;  %4329 = vmatmul.mubr.msk.f32.vlgmr.msra.gmra.mrb[14].mxu0 %vm680_vm4, %v5216_v21 }
 0x912   :  { %4634 = vmatpush3.bf16.msra.mxu0 %v5186_v54  ;;  %4350 = vmatprep.mubr.msk.f32.mxu0 %vm4911_vm2, %v4912_v30 }
 0x913   :  { %4635 = vmatprep.subr.bf16.mxu0 %v4910_v25 }
 0x916   :  { %4637 = vmatpush3.bf16.msra.mxu0 %v5192_v56 }
 0x917   :  { %4358 = vmatprep.subr.mxu0 %v4912_v30 }
 0x97a   :  { %v1031_v5 = vpop.permute.xlu0 %1030 }
 0x97b   :  { %4351 = vmatmul.mubr.msk.f32.vlgmr.msra.gmra.mrb[16].mxu0 %vm226_vm1, %v1031_v5 }
 0x97c   :  { %4360 = vmatprep.mubr.msk.f32.mxu0 %vm4911_vm2, %v4912_v30 }
 0x9e4   :  { %v5267_v6 = vpop.f32.mrb[14].mxu0 }
 0x9e5   :  { %v4330_v7 = vpop.f32.mrb[15].mxu0 }
 0xa4e   :  { %v5269_v9 = vpop.f32.mrb[16].mxu0 }
 0xa4f   :  { %v1104_v13 = vadd.f32 %v5269_v9, %v5154_v23  ;;  %v4352_v15 = vpop.f32.mrb[17].mxu0 }
 0xa51   :  { %v5274_v17 = vadd.f32 %v1104_v13, %v841_v11 }
 0xa53   :  { %v1106_v19 = vsel %vm665_vm3, %v5274_v17, -inf }
 0xa54   :  { %1107 = vmax.xlane.f32.xlu0 %v1106_v19 }
 0xae1   :  { %v1108_v20 = vpop.xlane.xlu0 %1107 }
 0xae2   :  { %v1109_v24 = vrot.slane %v1108_v20, 4 }
 0xae4   :  { %v1110_v26 = vmax.f32 %v1108_v20, %v1109_v24 }
 0xae6   :  { %v1111_v27 = vrot.slane %v1110_v26, 2 }
 0xae8   :  { %v1112_v31 = vmax.f32 %v1110_v26, %v1111_v27 }
 0xaea   :  { %v1113_v33 = vrot.slane %v1112_v31, 1 }
 0xaec   :  { %v1114_v35 = vmax.f32 %v1112_v31, %v1113_v33 }
 0xaee   :  { %4712 = vpush %v1114_v35 }
 0xb1f   :  { %s4713_s12 = spop %4712 }
 0xb20   :  { %v1116_v2 = vstv %s4713_s12 }
 0xb21   :  { %v1117_v37 = vsub.f32 %v5274_v17, %v1116_v2 }
 0xb23   :  { %v1118_v23 = vmul.f32 1.442695, %v1117_v37 }
 0xb25   :  { %4762 = vpow2.f32 %v1118_v23 }
 0xb2f   :  { %v4763_v39 = vpop.eup %4762 }
 0xb30   :  { %4354 = vmatpush3.msra.mxu1 %v4763_v39 }
 0xb31   :  { %4356 = vmatmul.mubr.msk.f32.vlgmr.msra.gmra.mrb[20].mxu1 %vm680_vm4, %v5216_v21  ;;  %4363 = vmatprep.subr.mxu1 %v4912_v30 }
 0xb32   :  { %4365 = vmatprep.mubr.msk.f32.mxu1 %vm4911_vm2, %v4912_v30 }
 0xc04   :  { %v1186_v42 = vpop.f32.mrb[20].mxu1 }
 0xc05   :  { %v4357_v43 = vpop.f32.mrb[21].mxu1  ;;  %4764 = vrcp.f32 %v1186_v42 }
 0xc06   :  { %4766 = vlog2.f32 %v1186_v42 }
 0xc0f   :  { %v4765_v44 = vpop.eup %4764 }
 0xc10   :  { %1195 = vrot.lane.b32.xlu1 %v4765_v44, %s4915_s17  ;;  %v4767_v45 = vpop.eup %4766 }
 0xc11   :  { %v1191_v46 = vmul.f32 0.6931472, %v4767_v45 }
 0xc13   :  { %v1192_v47 = vadd.f32 %v1191_v46, %v1116_v2 }
 0xc82   :  { %v1196_v48 = vpop.permute.xlu1 %1195 }
 0xc83   :  { %v1198_v49 = vsel %vm665_vm3, %v1192_v47, %v1196_v48 }
 0xc84   :  { %4359 = vmatpush3.msk.msra.mxu0 %vm767_vm5, %v1198_v49 }
 0xc85   :  { %4361 = vmatmul.mubr.msk.f32.vlgmr.msra.gmra.mrb[18].mxu0 %vm763_vm6, %v5227_v41  ;;  %4638 = vmatprep.subr.bf16.mxu0 %v4910_v25 }
 0xc86   :  { %4640 = vmatpush3.bf16.msra.mxu0 %v5074_v22  ;;  %4376 = vmatprep.mubr.msk.f32.mxu0 %vm4911_vm2, %v4912_v30 }
 0xc87   :  { %4641 = vmatprep.subr.bf16.mxu0 %v4910_v25 }
 0xc8a   :  { %4643 = vmatpush3.bf16.msra.mxu0 %v5091_v29 }
 0xc8b   :  { %4390 = vmatprep.subr.mxu0 %v4912_v30 }
 0xc8d   :  { %4377 = vmatmul.mubr.msk.f32.vlgmr.msra.gmra.mrb[20].mxu0 %vm226_vm1, %v1031_v5 }
 0xc8e   :  { %4392 = vmatprep.mubr.msk.f32.mxu0 %vm4911_vm2, %v4912_v30 }
 0xd58   :  { %v1268_v51 = vpop.f32.mrb[18].mxu0 }
 0xd59   :  { %1274 = vrot.lane.b32.xlu0 %v1268_v51, %s4916_s21  ;;  %v4362_v52 = vpop.f32.mrb[19].mxu0  ;;  %v1272_v31 = vsub.f32 %v5274_v17, %v1268_v51 }
 0xd60   :  { %v1422_v53 = vpop.f32.mrb[20].mxu0 }
 0xd61   :  { %v1426_v55 = vadd.f32 %v1422_v53, %v5144_v10  ;;  %v4378_v57 = vpop.f32.mrb[21].mxu0 }
 0xd63   :  { %4768 = vtanh.f32 %v1426_v55  ;;  %v4026_v59 = vmul.f32 -1.442695, %v1426_v55 }
 0xd65   :  { %4770 = vpow2.f32 %v4026_v59 }
 0xd6d   :  { %v4769_v58 = vpop.eup %4768 }
 0xd6e   :  { %1436 = vrot.lane.b32.xlu1 %v4769_v58, %s4913_s4 }
 0xd6f   :  { %v4771_v3 = vpop.eup %4770 }
 0xd70   :  { %v1430_v61 = vadd.f32 1.0, %v4771_v3 }
 0xd72   :  { %4772 = vrcp.f32 %v1430_v61 }
 0xd7c   :  { %v4773_v63 = vpop.eup %4772 }
 0xd7d   :  { %v1434_v1 = vmul.f32 %v4773_v63, %v5247_v60 }
 0xdcb   :  { %v1275_v7 = vpop.permute.xlu0 %1274 }
 0xdcc   :  { %v1277_v15 = vmul.f32 %v4763_v39, %v1275_v7 }
 0xde0   :  { %v1437_v0 = vpop.permute.xlu1 %1436 }
 0xde1   :  { %v1439_v50 = vmul.f32 %v4773_v63, %v1437_v0 }
 0xde3   :  { %1441 = vrot.lane.b32.xlu1 %v1439_v50, %s4913_s4 }
 0xe55   :  { %v1442_v4 = vpop.permute.xlu1 %1441 }
 0xe56   :  { %v5304_v5 = vadd.f32 %v1442_v4, %v1434_v1 }
 0xe58   :  { %4774 = vtanh.f32 %v5304_v5 }
 0xe62   :  { %v4775_v10 = vpop.eup %4774 }
 0xe63   :  { %1447 = vrot.lane.b32.xlu1 %v4775_v10, %s4913_s4 }
 0xe67   :  { %1279 = vrot.lane.b32.xlu1 %v5269_v9, %s4916_s21 }
 0xed5   :  { %v1448_v11 = vpop.permute.xlu1 %1447 }
 0xed6   :  { %v1450_v13 = vmul.f32 %v4773_v63, %v1448_v11 }
 0xed8   :  { %1452 = vrot.lane.b32.xlu1 %v1450_v13, %s4914_s3 }
 0xed9   :  { %v1280_v19 = vpop.permute.xlu1 %1279 }
 0xeda   :  { %v1282_v20 = vmul.f32 %v1280_v19, %v1277_v15 }
 0xedc   :  { %4364 = vmatpush3.msra.mxu1 %v1282_v20 }
 0xedd   :  { %4644 = vmatprep.subr.bf16.mxu1 %v4910_v25  ;;  %4366 = vmatmul.mubr.msk.f32.vlgmr.msra.gmra.mrb[22].mxu1 %vm680_vm4, %v5216_v21 }
 0xede   :  { %4646 = vmatpush3.bf16.msra.mxu1 %v5186_v54  ;;  %4387 = vmatprep.mubr.msk.f32.mxu1 %vm4911_vm2, %v4912_v30 }
 0xedf   :  { %4647 = vmatprep.subr.bf16.mxu1 %v4910_v25 }
 0xee2   :  { %4649 = vmatpush3.bf16.msra.mxu1 %v5192_v56 }
 0xee3   :  { %4395 = vmatprep.subr.mxu1 %v4912_v30 }
 0xf4a   :  { %v1453_v60 = vpop.permute.xlu1 %1452 }
 0xf4b   :  { %4388 = vmatmul.mubr.msk.f32.vlgmr.msra.gmra.mrb[24].mxu1 %vm226_vm1, %v1453_v60 }
 0xf4c   :  { %4397 = vmatprep.mubr.msk.f32.mxu1 %vm4911_vm2, %v4912_v30 }
 0xfb0   :  { %v5323_v24 = vpop.f32.mrb[22].mxu1 }
 0xfb1   :  { %v4367_v26 = vpop.f32.mrb[23].mxu1 }
0x101e   :  { %v5325_v27 = vpop.f32.mrb[24].mxu1 }
0x101f   :  { %v1526_v33 = vadd.f32 %v5325_v27, %v5163_v32  ;;  %v4389_v35 = vpop.f32.mrb[25].mxu1 }
0x1021   :  { %v5330_v2 = vadd.f32 %v1526_v33, %v1272_v31 }
0x1023   :  { %v1528_v37 = vsel %vm665_vm3, %v5330_v2, -inf }
0x1024   :  { %1529 = vmax.xlane.f32.xlu1 %v1528_v37 }
0x10b1   :  { %v1530_v23 = vpop.xlane.xlu1 %1529 }
0x10b2   :  { %v1531_v39 = vrot.slane %v1530_v23, 4 }
0x10b4   :  { %v1532_v42 = vmax.f32 %v1530_v23, %v1531_v39 }
0x10b6   :  { %v1533_v43 = vrot.slane %v1532_v42, 2 }
0x10b8   :  { %v1534_v44 = vmax.f32 %v1532_v42, %v1533_v43 }
0x10ba   :  { %v1535_v45 = vrot.slane %v1534_v44, 1 }
0x10bc   :  { %v1536_v46 = vmax.f32 %v1534_v44, %v1535_v45 }
0x10be   :  { %4714 = vpush %v1536_v46 }
0x10ef   :  { %s4715_s22 = spop %4714 }
0x10f0   :  { %v1538_v17 = vstv %s4715_s22 }
0x10f1   :  { %v1539_v47 = vsub.f32 %v5330_v2, %v1538_v17 }
0x10f3   :  { %v1540_v32 = vmul.f32 1.442695, %v1539_v47 }
0x10f5   :  { %4776 = vpow2.f32 %v1540_v32 }
0x10ff   :  { %v4777_v48 = vpop.eup %4776 }
0x1100   :  { %4391 = vmatpush3.msra.mxu0 %v4777_v48 }
0x1101   :  { %4393 = vmatmul.mubr.msk.f32.vlgmr.msra.gmra.mrb[22].mxu0 %vm680_vm4, %v5216_v21  ;;  %4400 = vmatprep.subr.mxu0 %v4912_v30 }
0x1102   :  { %4402 = vmatprep.mubr.msk.f32.mxu0 %vm4911_vm2, %v4912_v30 }
0x11d4   :  { %v1608_v49 = vpop.f32.mrb[22].mxu0 }
0x11d5   :  { %v4394_v51 = vpop.f32.mrb[23].mxu0  ;;  %4778 = vrcp.f32 %v1608_v49 }
0x11d6   :  { %4780 = vlog2.f32 %v1608_v49 }
0x11df   :  { %v4779_v52 = vpop.eup %4778 }
0x11e0   :  { %1617 = vrot.lane.b32.xlu0 %v4779_v52, %s4915_s17  ;;  %v4781_v53 = vpop.eup %4780 }
0x11e1   :  { %v1613_v55 = vmul.f32 0.6931472, %v4781_v53 }
0x11e3   :  { %v1614_v57 = vadd.f32 %v1613_v55, %v1538_v17 }
0x1252   :  { %v1618_v58 = vpop.permute.xlu0 %1617 }
0x1253   :  { %v1620_v59 = vsel %vm665_vm3, %v1614_v57, %v1618_v58 }
0x1254   :  { %4396 = vmatpush3.msk.msra.mxu1 %vm767_vm5, %v1620_v59 }
0x1255   :  { %4398 = vmatmul.mubr.msk.f32.vlgmr.msra.gmra.mrb[26].mxu1 %vm763_vm6, %v5227_v41  ;;  %4650 = vmatprep.subr.bf16.mxu1 %v4910_v25 }
0x1256   :  { %4652 = vmatpush3.bf16.msra.mxu1 %v5074_v22  ;;  %4413 = vmatprep.mubr.msk.f32.mxu1 %vm4911_vm2, %v4912_v30 }
0x1257   :  { %4653 = vmatprep.subr.bf16.mxu1 %v4910_v25 }
0x125a   :  { %4655 = vmatpush3.bf16.msra.mxu1 %v5091_v29 }
0x125b   :  { %4427 = vmatprep.subr.mxu1 %v4912_v30 }
0x125d   :  { %4414 = vmatmul.mubr.msk.f32.vlgmr.msra.gmra.mrb[28].mxu1 %vm226_vm1, %v1453_v60 }
0x125e   :  { %4429 = vmatprep.mubr.msk.f32.mxu1 %vm4911_vm2, %v4912_v30 }
0x1328   :  { %v1690_v3 = vpop.f32.mrb[26].mxu1 }
0x1329   :  { %v4399_v61 = vpop.f32.mrb[27].mxu1  ;;  %v1694_v44 = vsub.f32 %v5330_v2, %v1690_v3 }
0x1330   :  { %v1844_v63 = vpop.f32.mrb[28].mxu1 }
0x1331   :  { %v1848_v0 = vadd.f32 %v1844_v63, %v5142_v8  ;;  %v4415_v50 = vpop.f32.mrb[29].mxu1 }
0x1333   :  { %4782 = vtanh.f32 %v1848_v0  ;;  %v4033_v4 = vmul.f32 -1.442695, %v1848_v0 }
0x1335   :  { %4784 = vpow2.f32 %v4033_v4 }
0x133d   :  { %v4783_v1 = vpop.eup %4782 }
0x133e   :  { %1858 = vrot.lane.b32.xlu0 %v4783_v1, %s4913_s4 }
0x133f   :  { %v4785_v10 = vpop.eup %4784 }
0x1340   :  { %v1852_v7 = vadd.f32 1.0, %v4785_v10 }
0x1342   :  { %4786 = vrcp.f32 %v1852_v7 }
0x134c   :  { %v4787_v11 = vpop.eup %4786 }
0x134d   :  { %v1856_v19 = vmul.f32 %v4787_v11, %v5304_v5 }
0x13b0   :  { %v1859_v13 = vpop.permute.xlu0 %1858 }
0x13b1   :  { %v1861_v15 = vmul.f32 %v4787_v11, %v1859_v13 }
0x13b3   :  { %1863 = vrot.lane.b32.xlu0 %v1861_v15, %s4913_s4 }
0x1425   :  { %v1864_v20 = vpop.permute.xlu0 %1863 }
0x1426   :  { %v5359_v60 = vadd.f32 %v1864_v20, %v1856_v19 }
0x1428   :  { %4788 = vtanh.f32 %v5359_v60 }
0x1432   :  { %v4789_v8 = vpop.eup %4788 }
0x1433   :  { %1869 = vrot.lane.b32.xlu0 %v4789_v8, %s4913_s4 }
0x1437   :  { %1696 = vrot.lane.b32.xlu0 %v1690_v3, %s4916_s21 }
0x143b   :  { %1701 = vrot.lane.b32.xlu0 %v5325_v27, %s4916_s21 }
0x14a5   :  { %v1870_v26 = vpop.permute.xlu0 %1869 }
0x14a6   :  { %v1872_v31 = vmul.f32 %v4787_v11, %v1870_v26 }
0x14a8   :  { %1874 = vrot.lane.b32.xlu0 %v1872_v31, %s4914_s3 }
0x14a9   :  { %v1697_v33 = vpop.permute.xlu0 %1696 }
0x14aa   :  { %v1699_v35 = vmul.f32 %v4777_v48, %v1697_v33 }
0x14ad   :  { %v1702_v5 = vpop.permute.xlu0 %1701 }
0x14ae   :  { %v1704_v37 = vmul.f32 %v1702_v5, %v1699_v35 }
0x14b0   :  { %4401 = vmatpush3.msra.mxu0 %v1704_v37 }
0x14b1   :  { %4656 = vmatprep.subr.bf16.mxu0 %v4910_v25  ;;  %4403 = vmatmul.mubr.msk.f32.vlgmr.msra.gmra.mrb[24].mxu0 %vm680_vm4, %v5216_v21 }
0x14b2   :  { %4658 = vmatpush3.bf16.msra.mxu0 %v5186_v54  ;;  %4424 = vmatprep.mubr.msk.f32.mxu0 %vm4911_vm2, %v4912_v30 }
0x14b3   :  { %4659 = vmatprep.subr.bf16.mxu0 %v4910_v25 }
0x14b6   :  { %4661 = vmatpush3.bf16.msra.mxu0 %v5192_v56 }
0x14b7   :  { %4432 = vmatprep.subr.mxu0 %v4912_v30 }
0x151a   :  { %v1875_v23 = vpop.permute.xlu0 %1874 }
0x151b   :  { %4425 = vmatmul.mubr.msk.f32.vlgmr.msra.gmra.mrb[26].mxu0 %vm226_vm1, %v1875_v23 }
0x151c   :  { %4434 = vmatprep.mubr.msk.f32.mxu0 %vm4911_vm2, %v4912_v30 }
0x1584   :  { %v5379_v39 = vpop.f32.mrb[24].mxu0 }
0x1585   :  { %v4404_v42 = vpop.f32.mrb[25].mxu0 }
0x15ee   :  { %v5381_v43 = vpop.f32.mrb[26].mxu0 }
0x15ef   :  { %v1948_v45 = vadd.f32 %v5381_v43, %v5161_v28  ;;  %v4426_v46 = vpop.f32.mrb[27].mxu0 }
0x15f1   :  { %v5386_v17 = vadd.f32 %v1948_v45, %v1694_v44 }
0x15f3   :  { %v1950_v47 = vsel %vm665_vm3, %v5386_v17, -inf }
0x15f4   :  { %1951 = vmax.xlane.f32.xlu1 %v1950_v47 }
0x1681   :  { %v1952_v32 = vpop.xlane.xlu1 %1951 }
0x1682   :  { %v1953_v48 = vrot.slane %v1952_v32, 4 }
0x1684   :  { %v1954_v49 = vmax.f32 %v1952_v32, %v1953_v48 }
0x1686   :  { %v1955_v51 = vrot.slane %v1954_v49, 2 }
0x1688   :  { %v1956_v52 = vmax.f32 %v1954_v49, %v1955_v51 }
0x168a   :  { %v1957_v53 = vrot.slane %v1956_v52, 1 }
0x168c   :  { %v1958_v55 = vmax.f32 %v1956_v52, %v1957_v53 }
0x168e   :  { %4716 = vpush %v1958_v55 }
0x16bf   :  { %s4717_s23 = spop %4716 }
0x16c0   :  { %v1960_v2 = vstv %s4717_s23 }
0x16c1   :  { %v1961_v57 = vsub.f32 %v5386_v17, %v1960_v2 }
0x16c3   :  { %v1962_v28 = vmul.f32 1.442695, %v1961_v57 }
0x16c5   :  { %4790 = vpow2.f32 %v1962_v28 }
0x16cf   :  { %v4791_v58 = vpop.eup %4790 }
0x16d0   :  { %4428 = vmatpush3.msra.mxu1 %v4791_v58 }
0x16d1   :  { %4430 = vmatmul.mubr.msk.f32.vlgmr.msra.gmra.mrb[30].mxu1 %vm680_vm4, %v5216_v21  ;;  %4437 = vmatprep.subr.mxu1 %v4912_v30 }
0x16d2   :  { %4439 = vmatprep.mubr.msk.f32.mxu1 %vm4911_vm2, %v4912_v30 }
0x17a4   :  { %v2030_v59 = vpop.f32.mrb[30].mxu1 }
0x17a5   :  { %v4431_v3 = vpop.f32.mrb[31].mxu1  ;;  %4792 = vrcp.f32 %v2030_v59 }
0x17a6   :  { %4794 = vlog2.f32 %v2030_v59 }
0x17af   :  { %v4793_v61 = vpop.eup %4792 }
0x17b0   :  { %2039 = vrot.lane.b32.xlu0 %v4793_v61, %s4915_s17  ;;  %v4795_v63 = vpop.eup %4794 }
0x17b1   :  { %v2035_v0 = vmul.f32 0.6931472, %v4795_v63 }
0x17b3   :  { %v2036_v50 = vadd.f32 %v2035_v0, %v1960_v2 }
0x1822   :  { %v2040_v1 = vpop.permute.xlu0 %2039 }
0x1823   :  { %v2042_v4 = vsel %vm665_vm3, %v2036_v50, %v2040_v1 }
0x1824   :  { %4433 = vmatpush3.msk.msra.mxu0 %vm767_vm5, %v2042_v4 }
0x1825   :  { %4435 = vmatmul.mubr.msk.f32.vlgmr.msra.gmra.mrb[28].mxu0 %vm763_vm6, %v5227_v41  ;;  %4662 = vmatprep.subr.bf16.mxu0 %v4910_v25 }
0x1826   :  { %4664 = vmatpush3.bf16.msra.mxu0 %v5074_v22  ;;  %4450 = vmatprep.mubr.msk.f32.mxu0 %vm4911_vm2, %v4912_v30 }
0x1827   :  { %4665 = vmatprep.subr.bf16.mxu0 %v4910_v25 }
0x182a   :  { %4667 = vmatpush3.bf16.msra.mxu0 %v5091_v29 }
0x182b   :  { %4464 = vmatprep.subr.mxu0 %v4912_v30 }
0x182d   :  { %4451 = vmatmul.mubr.msk.f32.vlgmr.msra.gmra.mrb[30].mxu0 %vm226_vm1, %v1875_v23 }
0x182e   :  { %4466 = vmatprep.mubr.msk.f32.mxu0 %vm4911_vm2, %v4912_v30 }
0x18f8   :  { %v2112_v10 = vpop.f32.mrb[28].mxu0 }
0x18f9   :  { %v4436_v7 = vpop.f32.mrb[29].mxu0  ;;  %v2116_v52 = vsub.f32 %v5386_v17, %v2112_v10 }
0x1900   :  { %v2266_v11 = vpop.f32.mrb[30].mxu0 }
0x1901   :  { %v2270_v13 = vadd.f32 %v2266_v11, %v5148_v14  ;;  %v4452_v15 = vpop.f32.mrb[31].mxu0 }
0x1903   :  { %4796 = vtanh.f32 %v2270_v13  ;;  %v4040_v20 = vmul.f32 -1.442695, %v2270_v13 }
0x1905   :  { %4798 = vpow2.f32 %v4040_v20 }
0x190d   :  { %v4797_v19 = vpop.eup %4796 }
0x190e   :  { %2280 = vrot.lane.b32.xlu1 %v4797_v19, %s4913_s4 }
0x190f   :  { %v4799_v8 = vpop.eup %4798 }
0x1910   :  { %v2274_v26 = vadd.f32 1.0, %v4799_v8 }
0x1912   :  { %4800 = vrcp.f32 %v2274_v26 }
0x191c   :  { %v4801_v31 = vpop.eup %4800 }
0x191d   :  { %v2278_v5 = vmul.f32 %v4801_v31, %v5359_v60 }
0x1980   :  { %v2281_v33 = vpop.permute.xlu1 %2280 }
0x1981   :  { %v2283_v35 = vmul.f32 %v4801_v31, %v2281_v33 }
0x1983   :  { %2285 = vrot.lane.b32.xlu0 %v2283_v35, %s4913_s4 }
0x19f5   :  { %v2286_v37 = vpop.permute.xlu0 %2285 }
0x19f6   :  { %v5415_v23 = vadd.f32 %v2286_v37, %v2278_v5 }
0x19f8   :  { %4802 = vtanh.f32 %v5415_v23 }
0x1a02   :  { %v4803_v14 = vpop.eup %4802 }
0x1a03   :  { %2291 = vrot.lane.b32.xlu0 %v4803_v14, %s4913_s4 }
0x1a07   :  { %2118 = vrot.lane.b32.xlu0 %v2112_v10, %s4916_s21 }
0x1a0b   :  { %2123 = vrot.lane.b32.xlu0 %v5381_v43, %s4916_s21 }
0x1a75   :  { %v2292_v42 = vpop.permute.xlu0 %2291 }
0x1a76   :  { %v2294_v44 = vmul.f32 %v4801_v31, %v2292_v42 }
0x1a78   :  { %2296 = vrot.lane.b32.xlu1 %v2294_v44, %s4914_s3 }
0x1a79   :  { %v2119_v45 = vpop.permute.xlu0 %2118 }
0x1a7a   :  { %v2121_v46 = vmul.f32 %v4791_v58, %v2119_v45 }
0x1a7d   :  { %v2124_v60 = vpop.permute.xlu0 %2123 }
0x1a7e   :  { %v2126_v47 = vmul.f32 %v2124_v60, %v2121_v46 }
0x1a80   :  { %4438 = vmatpush3.msra.mxu1 %v2126_v47 }
0x1a81   :  { %4668 = vmatprep.subr.bf16.mxu1 %v4910_v25  ;;  %4440 = vmatmul.mubr.msk.f32.vlgmr.msra.gmra.mrb[32].mxu1 %vm680_vm4, %v5216_v21 }
0x1a82   :  { %4670 = vmatpush3.bf16.msra.mxu1 %v5186_v54  ;;  %4461 = vmatprep.mubr.msk.f32.mxu1 %vm4911_vm2, %v4912_v30 }
0x1a83   :  { %4671 = vmatprep.subr.bf16.mxu1 %v4910_v25 }
0x1a86   :  { %4673 = vmatpush3.bf16.msra.mxu1 %v5192_v56 }
0x1a87   :  { %4469 = vmatprep.subr.mxu1 %v4912_v30 }
0x1aea   :  { %v2297_v32 = vpop.permute.xlu1 %2296 }
0x1aeb   :  { %4462 = vmatmul.mubr.msk.f32.vlgmr.msra.gmra.mrb[34].mxu1 %vm226_vm1, %v2297_v32 }
0x1aec   :  { %4471 = vmatprep.mubr.msk.f32.mxu1 %vm4911_vm2, %v4912_v30 }
0x1b54   :  { %v5435_v48 = vpop.f32.mrb[32].mxu1 }
0x1b55   :  { %v4441_v49 = vpop.f32.mrb[33].mxu1 }
0x1bbe   :  { %v5437_v51 = vpop.f32.mrb[34].mxu1 }
0x1bbf   :  { %v2370_v53 = vadd.f32 %v5437_v51, %v5167_v36  ;;  %v4463_v55 = vpop.f32.mrb[35].mxu1 }
0x1bc1   :  { %v5442_v2 = vadd.f32 %v2370_v53, %v2116_v52 }
0x1bc3   :  { %v2372_v57 = vsel %vm665_vm3, %v5442_v2, -inf }
0x1bc4   :  { %2373 = vmax.xlane.f32.xlu0 %v2372_v57 }
0x1c51   :  { %v2374_v28 = vpop.xlane.xlu0 %2373 }
0x1c52   :  { %v2375_v58 = vrot.slane %v2374_v28, 4 }
0x1c54   :  { %v2376_v59 = vmax.f32 %v2374_v28, %v2375_v58 }
0x1c56   :  { %v2377_v3 = vrot.slane %v2376_v59, 2 }
0x1c58   :  { %v2378_v61 = vmax.f32 %v2376_v59, %v2377_v3 }
0x1c5a   :  { %v2379_v63 = vrot.slane %v2378_v61, 1 }
0x1c5c   :  { %v2380_v0 = vmax.f32 %v2378_v61, %v2379_v63 }
0x1c5e   :  { %4718 = vpush %v2380_v0 }
0x1c8f   :  { %s4719_s24 = spop %4718 }
0x1c90   :  { %v2382_v17 = vstv %s4719_s24 }
0x1c91   :  { %v2383_v50 = vsub.f32 %v5442_v2, %v2382_v17 }
0x1c93   :  { %v2384_v36 = vmul.f32 1.442695, %v2383_v50 }
0x1c95   :  { %4804 = vpow2.f32 %v2384_v36 }
0x1c9f   :  { %v4805_v1 = vpop.eup %4804 }
0x1ca0   :  { %4465 = vmatpush3.msra.mxu0 %v4805_v1 }
0x1ca1   :  { %4467 = vmatmul.mubr.msk.f32.vlgmr.msra.gmra.mrb[32].mxu0 %vm680_vm4, %v5216_v21  ;;  %4474 = vmatprep.subr.mxu0 %v4912_v30 }
0x1ca2   :  { %4476 = vmatprep.mubr.msk.f32.mxu0 %vm4911_vm2, %v4912_v30 }
0x1d74   :  { %v2452_v4 = vpop.f32.mrb[32].mxu0 }
0x1d75   :  { %v4468_v10 = vpop.f32.mrb[33].mxu0  ;;  %4806 = vrcp.f32 %v2452_v4 }
0x1d76   :  { %4808 = vlog2.f32 %v2452_v4 }
0x1d7f   :  { %v4807_v7 = vpop.eup %4806 }
0x1d80   :  { %2461 = vrot.lane.b32.xlu1 %v4807_v7, %s4915_s17  ;;  %v4809_v11 = vpop.eup %4808 }
0x1d81   :  { %v2457_v13 = vmul.f32 0.6931472, %v4809_v11 }
0x1d83   :  { %v2458_v15 = vadd.f32 %v2457_v13, %v2382_v17 }
0x1df2   :  { %v2462_v19 = vpop.permute.xlu1 %2461 }
0x1df3   :  { %v2464_v20 = vsel %vm665_vm3, %v2458_v15, %v2462_v19 }
0x1df4   :  { %4470 = vmatpush3.msk.msra.mxu1 %vm767_vm5, %v2464_v20 }
0x1df5   :  { %4472 = vmatmul.mubr.msk.f32.vlgmr.msra.gmra.mrb[36].mxu1 %vm763_vm6, %v5227_v41  ;;  %4674 = vmatprep.subr.bf16.mxu1 %v4910_v25 }
0x1df6   :  { %4676 = vmatpush3.bf16.msra.mxu1 %v5074_v22  ;;  %4487 = vmatprep.mubr.msk.f32.mxu1 %vm4911_vm2, %v4912_v30 }
0x1df7   :  { %4677 = vmatprep.subr.bf16.mxu1 %v4910_v25 }
0x1dfa   :  { %4679 = vmatpush3.bf16.msra.mxu1 %v5091_v29 }
0x1dfb   :  { %4501 = vmatprep.subr.mxu1 %v4912_v30 }
0x1dfd   :  { %4488 = vmatmul.mubr.msk.f32.vlgmr.msra.gmra.mrb[38].mxu1 %vm226_vm1, %v2297_v32 }
0x1dfe   :  { %4503 = vmatprep.mubr.msk.f32.mxu1 %vm4911_vm2, %v4912_v30 }
0x1ec8   :  { %v2534_v8 = vpop.f32.mrb[36].mxu1 }
0x1ec9   :  { %v4473_v26 = vpop.f32.mrb[37].mxu1  ;;  %v2538_v61 = vsub.f32 %v5442_v2, %v2534_v8 }
0x1ed0   :  { %v2688_v31 = vpop.f32.mrb[38].mxu1 }
0x1ed1   :  { %v2692_v33 = vadd.f32 %v2688_v31, %v5146_v12  ;;  %v4489_v35 = vpop.f32.mrb[39].mxu1 }
0x1ed3   :  { %4810 = vtanh.f32 %v2692_v33  ;;  %v4047_v37 = vmul.f32 -1.442695, %v2692_v33 }
0x1ed5   :  { %4812 = vpow2.f32 %v4047_v37 }
0x1edd   :  { %v4811_v5 = vpop.eup %4810 }
0x1ede   :  { %2702 = vrot.lane.b32.xlu1 %v4811_v5, %s4913_s4 }
0x1edf   :  { %v4813_v14 = vpop.eup %4812 }
0x1ee0   :  { %v2696_v42 = vadd.f32 1.0, %v4813_v14 }
0x1ee2   :  { %4814 = vrcp.f32 %v2696_v42 }
0x1eec   :  { %v4815_v44 = vpop.eup %4814 }
0x1eed   :  { %v2700_v60 = vmul.f32 %v4815_v44, %v5415_v23 }
0x1f50   :  { %v2703_v45 = vpop.permute.xlu1 %2702 }
0x1f51   :  { %v2705_v46 = vmul.f32 %v4815_v44, %v2703_v45 }
0x1f53   :  { %2707 = vrot.lane.b32.xlu1 %v2705_v46, %s4913_s4 }
0x1fc5   :  { %v2708_v47 = vpop.permute.xlu1 %2707 }
0x1fc6   :  { %v5471_v32 = vadd.f32 %v2708_v47, %v2700_v60 }
0x1fc8   :  { %4816 = vtanh.f32 %v5471_v32 }
0x1fd2   :  { %v4817_v12 = vpop.eup %4816 }
0x1fd3   :  { %2713 = vrot.lane.b32.xlu1 %v4817_v12, %s4913_s4 }
0x1fd7   :  { %2540 = vrot.lane.b32.xlu1 %v2534_v8, %s4916_s21 }
0x1fdb   :  { %2545 = vrot.lane.b32.xlu1 %v5437_v51, %s4916_s21 }
0x2045   :  { %v2714_v49 = vpop.permute.xlu1 %2713 }
0x2046   :  { %v2716_v52 = vmul.f32 %v4815_v44, %v2714_v49 }
0x2048   :  { %2718 = vrot.lane.b32.xlu1 %v2716_v52, %s4914_s3 }
0x2049   :  { %v2541_v53 = vpop.permute.xlu1 %2540 }
0x204a   :  { %v2543_v55 = vmul.f32 %v4805_v1, %v2541_v53 }
0x204d   :  { %v2546_v23 = vpop.permute.xlu1 %2545 }
0x204e   :  { %v2548_v57 = vmul.f32 %v2546_v23, %v2543_v55 }
0x2050   :  { %4475 = vmatpush3.msra.mxu0 %v2548_v57 }
0x2051   :  { %4680 = vmatprep.subr.bf16.mxu0 %v4910_v25  ;;  %4477 = vmatmul.mubr.msk.f32.vlgmr.msra.gmra.mrb[34].mxu0 %vm680_vm4, %v5216_v21 }
0x2052   :  { %4682 = vmatpush3.bf16.msra.mxu0 %v5186_v54  ;;  %4498 = vmatprep.mubr.msk.f32.mxu0 %vm4911_vm2, %v4912_v30 }
0x2053   :  { %4683 = vmatprep.subr.bf16.mxu0 %v4910_v25 }
0x2056   :  { %4685 = vmatpush3.bf16.msra.mxu0 %v5192_v56 }
0x2057   :  { %4506 = vmatprep.subr.mxu0 %v4912_v30 }
0x20ba   :  { %v2719_v28 = vpop.permute.xlu1 %2718 }
0x20bb   :  { %4499 = vmatmul.mubr.msk.f32.vlgmr.msra.gmra.mrb[36].mxu0 %vm226_vm1, %v2719_v28 }
0x20bc   :  { %4508 = vmatprep.mubr.msk.f32.mxu0 %vm4911_vm2, %v4912_v30 }
0x2124   :  { %v5491_v58 = vpop.f32.mrb[34].mxu0 }
0x2125   :  { %v4478_v59 = vpop.f32.mrb[35].mxu0 }
0x218e   :  { %v5493_v3 = vpop.f32.mrb[36].mxu0 }
0x218f   :  { %v2792_v63 = vadd.f32 %v5493_v3, %v5165_v34  ;;  %v4500_v0 = vpop.f32.mrb[37].mxu0 }
0x2191   :  { %v5498_v17 = vadd.f32 %v2792_v63, %v2538_v61 }
0x2193   :  { %v2794_v50 = vsel %vm665_vm3, %v5498_v17, -inf }
0x2194   :  { %2795 = vmax.xlane.f32.xlu1 %v2794_v50 }
0x21a5   :  { %2967 = vrot.lane.b32.xlu1 %v5493_v3, %s4916_s21 }
0x2221   :  { %v2796_v36 = vpop.xlane.xlu1 %2795 }
0x2222   :  { %v2797_v1 = vrot.slane %v2796_v36, 4 }
0x2224   :  { %v2798_v4 = vmax.f32 %v2796_v36, %v2797_v1 }
0x2225   :  { %v2968_v63 = vpop.permute.xlu1 %2967 }
0x2226   :  { %v2799_v10 = vrot.slane %v2798_v4, 2 }
0x2228   :  { %v2800_v7 = vmax.f32 %v2798_v4, %v2799_v10 }
0x222a   :  { %v2801_v11 = vrot.slane %v2800_v7, 1 }
0x222c   :  { %v2802_v2 = vmax.f32 %v2800_v7, %v2801_v11 }
0x222e   :  { %4720 = vpush %v2802_v2 }
0x225f   :  { %s4721_s2 = spop %4720 }
0x2260   :  { %v2804_v34 = vstv %s4721_s2 }
0x2261   :  { %v2805_v13 = vsub.f32 %v5498_v17, %v2804_v34 }
0x2263   :  { %v2806_v15 = vmul.f32 1.442695, %v2805_v13 }
0x2265   :  { %4818 = vpow2.f32 %v2806_v15 }
0x226f   :  { %v4819_v19 = vpop.eup %4818 }
0x2270   :  { %4502 = vmatpush3.msra.mxu1 %v4819_v19 }
0x2271   :  { %4504 = vmatmul.mubr.msk.f32.vlgmr.msra.gmra.mrb[40].mxu1 %vm680_vm4, %v5216_v21  ;;  %4511 = vmatprep.subr.mxu1 %v4912_v30 }
0x2272   :  { %4513 = vmatprep.mubr.msk.f32.mxu1 %vm4911_vm2, %v4912_v30 }
0x2344   :  { %v2874_v20 = vpop.f32.mrb[40].mxu1 }
0x2345   :  { %v4505_v8 = vpop.f32.mrb[41].mxu1  ;;  %4820 = vrcp.f32 %v2874_v20 }
0x2346   :  { %4822 = vlog2.f32 %v2874_v20 }
0x234f   :  { %v4821_v26 = vpop.eup %4820 }
0x2350   :  { %2883 = vrot.lane.b32.xlu0 %v4821_v26, %s4915_s17  ;;  %v4823_v31 = vpop.eup %4822 }
0x2351   :  { %v2879_v33 = vmul.f32 0.6931472, %v4823_v31 }
0x2353   :  { %v2880_v35 = vadd.f32 %v2879_v33, %v2804_v34 }
0x23c2   :  { %v2884_v5 = vpop.permute.xlu0 %2883 }
0x23c3   :  { %v2886_v37 = vsel %vm665_vm3, %v2880_v35, %v2884_v5 }
0x23c4   :  { %4507 = vmatpush3.msk.msra.mxu0 %vm767_vm5, %v2886_v37 }
0x23c5   :  { %4509 = vmatmul.mubr.msk.f32.vlgmr.msra.gmra.mrb[38].mxu0 %vm763_vm6, %v5227_v41  ;;  %4686 = vmatprep.subr.bf16.mxu0 %v4910_v25 }
0x23c6   :  { %4688 = vmatpush3.bf16.msra.mxu0 %v5074_v22  ;;  %4524 = vmatprep.mubr.msk.f32.mxu0 %vm4911_vm2, %v4912_v30 }
0x23c7   :  { %4689 = vmatprep.subr.bf16.mxu0 %v4910_v25 }
0x23ca   :  { %4691 = vmatpush3.bf16.msra.mxu0 %v5091_v29 }
0x23cb   :  { %4538 = vmatprep.subr.mxu0 %v4912_v30 }
0x23cd   :  { %4525 = vmatmul.mubr.msk.f32.vlgmr.msra.gmra.mrb[40].mxu0 %vm226_vm1, %v2719_v28 }
0x23ce   :  { %4540 = vmatprep.mubr.msk.f32.mxu0 %vm4911_vm2, %v4912_v30 }
0x2498   :  { %v2956_v21 = vpop.f32.mrb[38].mxu0 }
0x2499   :  { %v4510_v41 = vpop.f32.mrb[39].mxu0  ;;  %v2960_v10 = vsub.f32 %v5498_v17, %v2956_v21 }
0x24a0   :  { %v3110_v14 = vpop.f32.mrb[40].mxu0 }
0x24a1   :  { %v3114_v42 = vadd.f32 %v3110_v14, %v5152_v18  ;;  %v4526_v44 = vpop.f32.mrb[41].mxu0 }
0x24a3   :  { %4824 = vtanh.f32 %v3114_v42  ;;  %v4054_v46 = vmul.f32 -1.442695, %v3114_v42 }
0x24a5   :  { %4826 = vpow2.f32 %v4054_v46  ;;  %v5575_v46 = vld [vmem:[%s5699_s11] sm:$0xff]  ;;  %s4917_s11 = smov 2  }
0x24ad   :  { %v4825_v45 = vpop.eup %4824 }
0x24ae   :  { %3124 = vrot.lane.b32.xlu0 %v4825_v45, %s4913_s4 }
0x24af   :  { %v4827_v60 = vpop.eup %4826 }
0x24b0   :  { %v3118_v47 = vadd.f32 1.0, %v4827_v60 }
0x24b2   :  { %4828 = vrcp.f32 %v3118_v47 }
0x24bc   :  { %v4829_v12 = vpop.eup %4828 }
0x24bd   :  { %v3122_v53 = vmul.f32 %v4829_v12, %v5471_v32  ;;  %v5539_v32 = vld [vmem:[%s5698_s10] sm:$0x3] }
0x2520   :  { %v3125_v49 = vpop.permute.xlu0 %3124 }
0x2521   :  { %v3127_v52 = vmul.f32 %v4829_v12, %v3125_v49 }
0x2523   :  { %3129 = vrot.lane.b32.xlu0 %v3127_v52, %s4913_s4 }
0x2595   :  { %v3130_v55 = vpop.permute.xlu0 %3129 }
0x2596   :  { %v5529_v23 = vadd.f32 %v3130_v55, %v3122_v53 }
0x2598   :  { %4830 = vtanh.f32 %v5529_v23 }
0x25a2   :  { %v4831_v18 = vpop.eup %4830 }
0x25a3   :  { %3135 = vrot.lane.b32.xlu0 %v4831_v18, %s4913_s4 }
0x25a7   :  { %2962 = vrot.lane.b32.xlu0 %v2956_v21, %s4916_s21 }
0x2615   :  { %v3136_v57 = vpop.permute.xlu0 %3135 }
0x2616   :  { %v3138_v28 = vmul.f32 %v4829_v12, %v3136_v57 }
0x2618   :  { %3140 = vrot.lane.b32.xlu0 %v3138_v28, %s4914_s3 }
0x2619   :  { %v2963_v59 = vpop.permute.xlu0 %2962 }
0x261a   :  { %v2965_v61 = vmul.f32 %v4819_v19, %v2963_v59 }
0x261c   :  { %v2970_v0 = vmul.f32 %v2968_v63, %v2965_v61 }
0x261e   :  { %4512 = vmatpush3.msra.mxu1 %v2970_v0 }
0x261f   :  { %4692 = vmatprep.subr.bf16.mxu1 %v4910_v25  ;;  %4514 = vmatmul.mubr.msk.f32.vlgmr.msra.gmra.mrb[42].mxu1 %vm680_vm4, %v5539_v32 }
0x2620   :  { %4694 = vmatpush3.bf16.msra.mxu1 %v5186_v54  ;;  %4535 = vmatprep.mubr.msk.f32.mxu1 %vm4911_vm2, %v4912_v30 }
0x2621   :  { %4695 = vmatprep.subr.bf16.mxu1 %v4910_v25 }
0x2624   :  { %4697 = vmatpush3.bf16.msra.mxu1 %v5192_v56 }
0x2625   :  { %4543 = vmatprep.subr.mxu1 %v4912_v30 }
0x268a   :  { %v3141_v50 = vpop.permute.xlu0 %3140 }
0x268b   :  { %4536 = vmatmul.mubr.msk.f32.vlgmr.msra.gmra.mrb[44].mxu1 %vm226_vm1, %v3141_v50 }
0x268c   :  { %4545 = vmatprep.mubr.msk.f32.mxu1 %vm4911_vm2, %v4912_v30 }
0x26f2   :  { %v5552_v36 = vpop.f32.mrb[42].mxu1 }
0x26f3   :  { %v4515_v1 = vpop.f32.mrb[43].mxu1 }
0x275e   :  { %v5554_v4 = vpop.f32.mrb[44].mxu1 }
0x275f   :  { %v3214_v7 = vadd.f32 %v5554_v4, %v5171_v40  ;;  %v4537_v11 = vpop.f32.mrb[45].mxu1 }
0x2761   :  { %v5559_v2 = vadd.f32 %v3214_v7, %v2960_v10 }
0x2763   :  { %v3216_v34 = vsel %vm665_vm3, %v5559_v2, -inf }
0x2764   :  { %3217 = vmax.xlane.f32.xlu0 %v3216_v34 }
0x27f1   :  { %v3218_v13 = vpop.xlane.xlu0 %3217 }
0x27f2   :  { %v3219_v15 = vrot.slane %v3218_v13, 4 }
0x27f4   :  { %v3220_v19 = vmax.f32 %v3218_v13, %v3219_v15 }
0x27f6   :  { %v3221_v20 = vrot.slane %v3220_v19, 2 }
0x27f8   :  { %v3222_v8 = vmax.f32 %v3220_v19, %v3221_v20 }
0x27fa   :  { %v3223_v26 = vrot.slane %v3222_v8, 1 }
0x27fc   :  { %v3224_v31 = vmax.f32 %v3222_v8, %v3223_v26  ;;  %v5618_v8 = vld [vmem:[#allocation3] ss:$0 sm:$0xff] }
0x27fd   :  { %v1772_v26 = vadd.f32 %v5618_v8, %v5379_v39 }
0x27fe   :  { %4722 = vpush %v3224_v31 }
0x282f   :  { %s4723_s10 = spop %4722 }
0x2830   :  { %v3226_v17 = vstv %s4723_s10 }
0x2831   :  { %v3227_v33 = vsub.f32 %v5559_v2, %v3226_v17 }
0x2833   :  { %v3228_v40 = vmul.f32 1.442695, %v3227_v33 }
0x2835   :  { %4832 = vpow2.f32 %v3228_v40 }
0x283f   :  { %v4833_v35 = vpop.eup %4832 }
0x2840   :  { %4539 = vmatpush3.msra.mxu0 %v4833_v35 }
0x2841   :  { %4541 = vmatmul.mubr.msk.f32.vlgmr.msra.gmra.mrb[42].mxu0 %vm680_vm4, %v5539_v32  ;;  %4548 = vmatprep.subr.mxu0 %v4912_v30 }
0x2842   :  { %4550 = vmatprep.mubr.msk.f32.mxu0 %vm4911_vm2, %v4912_v30 }
0x2914   :  { %v3296_v5 = vpop.f32.mrb[42].mxu0 }
0x2915   :  { %v4542_v37 = vpop.f32.mrb[43].mxu0  ;;  %4834 = vrcp.f32 %v3296_v5 }
0x2916   :  { %4836 = vlog2.f32 %v3296_v5 }
0x291f   :  { %v4835_v21 = vpop.eup %4834 }
0x2920   :  { %3305 = vrot.lane.b32.xlu1 %v4835_v21, %s4915_s17  ;;  %v4837_v41 = vpop.eup %4836 }
0x2921   :  { %v3301_v14 = vmul.f32 0.6931472, %v4837_v41 }
0x2923   :  { %v3302_v42 = vadd.f32 %v3301_v14, %v3226_v17 }
0x2992   :  { %v3306_v44 = vpop.permute.xlu1 %3305 }
0x2993   :  { %v3308_v45 = vsel %vm665_vm3, %v3302_v42, %v3306_v44 }
0x2994   :  { %4544 = vmatpush3.msk.msra.mxu1 %vm767_vm5, %v3308_v45 }
0x2995   :  { %4546 = vmatmul.mubr.msk.f32.vlgmr.msra.gmra.mrb[46].mxu1 %vm763_vm6, %v5575_v46  ;;  %4698 = vmatprep.subr.bf16.mxu1 %v4910_v25 }
0x2996   :  { %4700 = vmatpush3.bf16.msra.mxu1 %v5074_v22  ;;  %4561 = vmatprep.mubr.msk.f32.mxu1 %vm4911_vm2, %v4912_v30 }
0x2997   :  { %4701 = vmatprep.subr.bf16.mxu1 %v4910_v25 }
0x299a   :  { %4703 = vmatpush3.bf16.msra.mxu1 %v5091_v29 }
0x299b   :  { %4575 = vmatprep.subr.mxu1 %v4912_v30 }
0x299d   :  { %4562 = vmatmul.mubr.msk.f32.vlgmr.msra.gmra.mrb[48].mxu1 %vm226_vm1, %v3141_v50 }
0x299e   :  { %4577 = vmatprep.mubr.msk.f32.mxu1 %vm4911_vm2, %v4912_v30 }
0x2a68   :  { %v3378_v60 = vpop.f32.mrb[46].mxu1 }
0x2a69   :  { %v4547_v47 = vpop.f32.mrb[47].mxu1 }
0x2a70   :  { %v3532_v12 = vpop.f32.mrb[48].mxu1 }
0x2a71   :  { %v3536_v49 = vadd.f32 %v3532_v12, %v5150_v16  ;;  %v4563_v22 = vpop.f32.mrb[49].mxu1 }
0x2a73   :  { %4838 = vtanh.f32 %v3536_v49  ;;  %v4061_v53 = vmul.f32 -1.442695, %v3536_v49 }
0x2a75   :  { %4840 = vpow2.f32 %v4061_v53 }
0x2a7d   :  { %v4839_v52 = vpop.eup %4838 }
0x2a7e   :  { %3546 = vrot.lane.b32.xlu1 %v4839_v52, %s4913_s4 }
0x2a7f   :  { %v4841_v29 = vpop.eup %4840 }
0x2a80   :  { %v3540_v55 = vadd.f32 1.0, %v4841_v29 }
0x2a82   :  { %4842 = vrcp.f32 %v3540_v55 }
0x2a8c   :  { %v4843_v18 = vpop.eup %4842 }
0x2a8d   :  { %v3544_v59 = vmul.f32 %v4843_v18, %v5529_v23 }
0x2af0   :  { %v3547_v57 = vpop.permute.xlu1 %3546 }
0x2af1   :  { %v3549_v28 = vmul.f32 %v4843_v18, %v3547_v57 }
0x2af3   :  { %3551 = vrot.lane.b32.xlu1 %v3549_v28, %s4913_s4 }
0x2b65   :  { %v3552_v61 = vpop.permute.xlu1 %3551 }
0x2b66   :  { %v3554_v63 = vadd.f32 %v3552_v61, %v3544_v59 }
0x2b68   :  { %4844 = vtanh.f32 %v3554_v63  ;;  %v2194_v63 = vadd.f32 %v5618_v8, %v5435_v48  ;;  %v3038_v48 = vadd.f32 %v5618_v8, %v5552_v36 }
0x2b69   :  { %4846 = vtanh.f32 %v1772_v26 }
0x2b72   :  { %v4845_v16 = vpop.eup %4844 }
0x2b73   :  { %3557 = vrot.lane.b32.xlu1 %v4845_v16, %s4913_s4  ;;  %v4847_v31 = vpop.eup %4846 }
0x2b77   :  { %3384 = vrot.lane.b32.xlu1 %v3378_v60, %s4916_s21 }
0x2b7b   :  { %3389 = vrot.lane.b32.xlu1 %v5554_v4, %s4916_s21 }
0x2be5   :  { %v3558_v0 = vpop.permute.xlu1 %3557 }
0x2be6   :  { %v3560_v50 = vmul.f32 %v4843_v18, %v3558_v0 }
0x2be8   :  { %3562 = vrot.lane.b32.xlu0 %v3560_v50, %s4914_s3  ;;  %s4886_s3 = scalar_lea.vmem %s3972_s7, 32 }
0x2be9   :  { %v3385_v1 = vpop.permute.xlu1 %3384  ;;  %p4887_p0 = scmp.ne.s32.totalorder %s3972_s7, %s4886_s3  ;;  %p4892_p2 = scmp.lt.s32.totalorder %s4886_s3, %s4886_s3 }
0x2bea   :  { %v3387_v10 = vmul.f32 %v4833_v35, %v3385_v1 }
0x2beb   :  { %p4893_p3 = por %p4892_p2, %p4891_p1 }
0x2bed   :  { %v3390_v7 = vpop.permute.xlu1 %3389  ;;  %p4894_p4 = pnand %p4893_p3, %p4887_p0 }
0x2bee   :  { %v3392_v11 = vmul.f32 %v3390_v7, %v3387_v10 }
0x2bf0   :  { %4549 = vmatpush3.msra.mxu0 %v3392_v11 }
0x2bf1   :  { %4704 = vmatprep.subr.bf16.mxu0 %v4910_v25  ;;  %4551 = vmatmul.mubr.msk.f32.vlgmr.msra.gmra.mrb[44].mxu0 %vm680_vm4, %v5539_v32 }
0x2bf2   :  { %4706 = vmatpush3.bf16.msra.mxu0 %v5186_v54  ;;  %4572 = vmatprep.mubr.msk.f32.mxu0 %vm4911_vm2, %v4912_v30  ;;  %v3382_v54 = vsub.f32 %v5559_v2, %v3378_v60 }
0x2bf3   :  { %4707 = vmatprep.subr.bf16.mxu0 %v4910_v25 }
0x2bf6   :  { %4709 = vmatpush3.bf16.msra.mxu0 %v5192_v56 }
0x2bf7   :  { %4580 = vmatprep.subr.mxu0 %v4912_v30 }
0x2c5a   :  { %v3563_v23 = vpop.permute.xlu0 %3562 }
0x2c5b   :  { %4573 = vmatmul.mubr.msk.f32.vlgmr.msra.gmra.mrb[46].mxu0 %vm226_vm1, %v3563_v23 }
0x2c5c   :  { %4582 = vmatprep.mubr.msk.f32.mxu0 %vm4911_vm2, %v4912_v30 }
0x2cc4   :  { %v5610_v34 = vpop.f32.mrb[44].mxu0 }
0x2cc5   :  { %v4552_v13 = vpop.f32.mrb[45].mxu0 }
0x2d2e   :  { %v5612_v15 = vpop.f32.mrb[46].mxu0 }
0x2d2f   :  { %v3636_v25 = vadd.f32 %v5612_v15, %v5169_v38  ;;  %v4574_v19 = vpop.f32.mrb[47].mxu0 }
0x2d31   :  { %v3637_v56 = vadd.f32 %v3636_v25, %v3382_v54 }
0x2d33   :  { %v3638_v20 = vsel %vm665_vm3, %v3637_v56, -inf }
0x2d34   :  { %3639 = vmax.xlane.f32.xlu1 %v3638_v20 }
0x2d45   :  { %3892 = vrot.lane.b32.xlu1 %v4847_v31, %s4917_s11 }
0x2dc1   :  { %v3640_v17 = vpop.xlane.xlu1 %3639 }
0x2dc2   :  { %v3641_v2 = vrot.slane %v3640_v17, 4 }
0x2dc4   :  { %v3642_v33 = vmax.f32 %v3640_v17, %v3641_v2 }
0x2dc5   :  { %v3893_v26 = vpop.permute.xlu1 %3892 }
0x2dc6   :  { %v3643_v40 = vrot.slane %v3642_v33, 2 }
0x2dc8   :  { %v3644_v38 = vmax.f32 %v3642_v33, %v3643_v40 }
0x2dca   :  { %v3645_v35 = vrot.slane %v3644_v38, 1 }
0x2dcc   :  { %v3646_v5 = vmax.f32 %v3644_v38, %v3645_v35 }
0x2dce   :  { %4724 = vpush %v3646_v5 }
0x2dff   :  { %s4725_s4 = spop %4724 }
0x2e00   :  { %v3648_v37 = vstv %s4725_s4 }
0x2e01   :  { %v3649_v21 = vsub.f32 %v3637_v56, %v3648_v37  ;;  %v925_v56 = vadd.f32 %v5618_v8, %v5267_v6 }
0x2e03   :  { %v3650_v41 = vmul.f32 1.442695, %v3649_v21 }
0x2e05   :  { %4848 = vpow2.f32 %v3650_v41 }
0x2e0f   :  { %v4849_v14 = vpop.eup %4848 }
0x2e10   :  { %4576 = vmatpush3.msra.mxu1 %v4849_v14 }
0x2e11   :  { %4578 = vmatmul.mubr.msk.f32.vlgmr.msra.gmra.mrb[50].mxu1 %vm680_vm4, %v5539_v32  ;;  %4585 = vmatprep.subr.mxu1 %v4912_v30 }
0x2e12   :  { %4587 = vmatprep.mubr.msk.f32.mxu1 %vm4911_vm2, %v4912_v30  ;;  %v1350_v30 = vadd.f32 %v5618_v8, %v5323_v24 }
0x2ee4   :  { %v3718_v39 = vpop.f32.mrb[50].mxu1 }
0x2ee5   :  { %v4579_v42 = vpop.f32.mrb[51].mxu1  ;;  %4850 = vrcp.f32 %v3718_v39 }
0x2ee6   :  { %4852 = vlog2.f32 %v3718_v39 }
0x2ee7   :  { %4854 = vtanh.f32 %v1350_v30 }
0x2eef   :  { %v4851_v44 = vpop.eup %4850 }
0x2ef0   :  { %3727 = vrot.lane.b32.xlu0 %v4851_v44, %s4915_s17  ;;  %v4853_v45 = vpop.eup %4852 }
0x2ef1   :  { %v3723_v60 = vmul.f32 0.6931472, %v4853_v45  ;;  %v4855_v53 = vpop.eup %4854 }
0x2ef3   :  { %v3724_v47 = vadd.f32 %v3723_v60, %v3648_v37 }
0x2f62   :  { %v3728_v12 = vpop.permute.xlu0 %3727 }
0x2f63   :  { %v3730_v49 = vsel %vm665_vm3, %v3724_v47, %v3728_v12 }
0x2f64   :  { %4581 = vmatpush3.msk.msra.mxu0 %vm767_vm5, %v3730_v49 }
0x2f65   :  { %4583 = vmatmul.mubr.msk.f32.vlgmr.msra.gmra.mrb[48].mxu0 %vm763_vm6, %v5575_v46 }
0x3038   :  { %v3800_v22 = vpop.f32.mrb[48].mxu0 }
0x3039   :  { %3805 = vrot.lane.b32.xlu0 %v3800_v22, %s4916_s21  ;;  %v4584_v52 = vpop.f32.mrb[49].mxu0 }
0x303d   :  { %3810 = vrot.lane.b32.xlu0 %v5612_v15, %s4916_s21 }
0x3041   :  { %929 = vrot.lane.b32.xlu0 %v5618_v8, %s4915_s17 }
0x3045   :  { %3888 = vrot.lane.b32.xlu0 %v4855_v53, %s4915_s17 }
0x30ab   :  { %v3806_v29 = vpop.permute.xlu0 %3805 }
0x30ac   :  { %v3808_v55 = vmul.f32 %v4849_v14, %v3806_v29 }
0x30af   :  { %v3811_v46 = vpop.permute.xlu0 %3810 }
0x30b0   :  { %v3813_v18 = vmul.f32 %v3811_v46, %v3808_v55 }
0x30b2   :  { %4586 = vmatpush3.msra.mxu1 %v3813_v18 }
0x30b3   :  { %4588 = vmatmul.mubr.msk.f32.vlgmr.msra.gmra.mrb[52].mxu1 %vm680_vm4, %v5539_v32  ;;  %v930_v24 = vpop.permute.xlu0 %929 }
0x30b4   :  { %v932_v57 = vadd.f32 %v930_v24, %v5202_v62  ;;  %v1354_v28 = vadd.f32 %v5269_v9, %v930_v24  ;;  %v2198_v59 = vadd.f32 %v5381_v43, %v930_v24  ;;  %v3885_v61 = vadd.f32 %v5612_v15, %v930_v24 }
0x30b5   :  { %v2620_v16 = vadd.f32 %v5437_v51, %v930_v24  ;;  %v1776_v0 = vadd.f32 %v5325_v27, %v930_v24  ;;  %v3042_v32 = vadd.f32 %v5493_v3, %v930_v24  ;;  %v2616_v62 = vadd.f32 %v5618_v8, %v5491_v58 }
0x30b6   :  { %4856 = vtanh.f32 %v932_v57  ;;  %v3464_v43 = vadd.f32 %v5554_v4, %v930_v24  ;;  %v3460_v27 = vadd.f32 %v5618_v8, %v5610_v34 }
0x30b7   :  { %4858 = vtanh.f32 %v2198_v59  ;;  %v3889_v54 = vpop.permute.xlu0 %3888 }
0x30b8   :  { %4860 = vtanh.f32 %v2194_v63 }
0x30b9   :  { %4862 = vtanh.f32 %v2620_v16 }
0x30ba   :  { %4864 = vtanh.f32 %v1776_v0 }
0x30bb   :  { %4866 = vtanh.f32 %v3042_v32 }
0x30bc   :  { %4868 = vtanh.f32 %v2616_v62 }
0x30bd   :  { %4870 = vtanh.f32 %v3464_v43 }
0x30be   :  { %4872 = vtanh.f32 %v3038_v48 }
0x30bf   :  { %4874 = vtanh.f32 %v3460_v27 }
0x30c0   :  { %v4857_v9 = vpop.eup %4856 }
0x30c1   :  { %3930 = vrot.lane.b32.xlu0 %v4857_v9, %s4916_s21  ;;  %v4859_v51 = vpop.eup %4858 }
0x30c2   :  { %v4861_v50 = vpop.eup %4860  ;;  %3938 = vrot.lane.b32.xlu1 %v4859_v51, %s4917_s11 }
0x30c3   :  { %v4863_v58 = vpop.eup %4862 }
0x30c4   :  { %v4865_v3 = vpop.eup %4864 }
0x30c5   :  { %3896 = vrot.lane.b32.xlu0 %v4861_v50, %s4918_s27  ;;  %v4867_v4 = vpop.eup %4866 }
0x30c6   :  { %3942 = vrot.lane.b32.xlu1 %v4863_v58, %s4918_s27  ;;  %v4869_v1 = vpop.eup %4868 }
0x30c7   :  { %v4871_v36 = vpop.eup %4870 }
0x30c8   :  { %v4873_v10 = vpop.eup %4872 }
0x30c9   :  { %3934 = vrot.lane.b32.xlu0 %v4865_v3, %s4915_s17  ;;  %v4875_v7 = vpop.eup %4874 }
0x30ca   :  { %3946 = vrot.lane.b32.xlu1 %v4867_v4, %s4919_s28 }
0x30cd   :  { %3900 = vrot.lane.b32.xlu0 %v4869_v1, %s4919_s28 }
0x30ce   :  { %3950 = vrot.lane.b32.xlu1 %v4871_v36, %s4920_s29 }
0x30d1   :  { %3904 = vrot.lane.b32.xlu0 %v4873_v10, %s4920_s29 }
0x30d5   :  { %3908 = vrot.lane.b32.xlu0 %v4875_v7, %s4921_s18 }
0x3133   :  { %v3931_v25 = vpop.permute.xlu0 %3930 }
0x3134   :  { %v3939_v31 = vpop.permute.xlu1 %3938 }
0x3137   :  { %v3897_v19 = vpop.permute.xlu0 %3896 }
0x3138   :  { %v3943_v2 = vpop.permute.xlu1 %3942 }
0x313b   :  { %v3935_v20 = vpop.permute.xlu0 %3934 }
0x313c   :  { %v3947_v21 = vpop.permute.xlu1 %3946 }
0x313f   :  { %v3901_v17 = vpop.permute.xlu0 %3900 }
0x3140   :  { %v3951_v47 = vpop.permute.xlu1 %3950 }
0x3143   :  { %v3905_v40 = vpop.permute.xlu0 %3904 }
0x3186   :  { %v3880_v11 = vpop.f32.mrb[52].mxu1 }
0x3187   :  { %v3881_v23 = vadd.f32 %v5618_v8, %v3880_v11  ;;  %v4589_v34 = vpop.f32.mrb[53].mxu1  ;;  %v3909_v8 = vpop.permute.xlu0 %3908 }
0x3189   :  { %4876 = vtanh.f32 %v3881_v23 }
0x318a   :  { %4878 = vtanh.f32 %v3885_v61 }
0x318b   :  { %4880 = vtanh.f32 %v1354_v28 }
0x318c   :  { %4882 = vtanh.f32 %v925_v56 }
0x3193   :  { %v4877_v13 = vpop.eup %4876 }
0x3194   :  { %3912 = vrot.lane.b32.xlu0 %v4877_v13, %s4922_s30  ;;  %v4879_v15 = vpop.eup %4878 }
0x3195   :  { %v4881_v33 = vpop.eup %4880 }
0x3196   :  { %v3957_v38 = vsel %vm665_vm3, %v3931_v25, %v4881_v33  ;;  %v4883_v35 = vpop.eup %4882 }
0x3197   :  { %v3958_v5 = vsel %vm763_vm6, %v3957_v38, %v3935_v20  ;;  %v3915_v37 = vsel %vm665_vm3, %v4883_v35, %v3889_v54 }
0x3198   :  { %3954 = vrot.lane.b32.xlu0 %v4879_v15, %s4921_s18  ;;  %v3959_v41 = vsel %vm3917_vm7, %v3958_v5, %v3939_v31  ;;  %v3916_v6 = vsel %vm763_vm6, %v3915_v37, %v3893_v26 }
0x3199   :  { %v3918_v14 = vsel %vm3917_vm7, %v3916_v6, %v3897_v19  ;;  %v3960_v39 = vsel %vm3919_vm8, %v3959_v41, %v3943_v2 }
0x319a   :  { %v3920_v42 = vsel %vm3919_vm8, %v3918_v14, %v3901_v17  ;;  %v3961_v12 = vsel %vm3921_vm9, %v3960_v39, %v3947_v21 }
0x319b   :  { %v3922_v44 = vsel %vm3921_vm9, %v3920_v42, %v3905_v40 }
0x319c   :  { %v3924_v45 = vsel %vm3923_vm11, %v3922_v44, %v3909_v8 }
0x3206   :  { %v3913_v60 = vpop.permute.xlu0 %3912 }
0x3207   :  { %v3926_v49 = vsel %vm3925_vm10, %v3924_v45, %v3913_v60 }
0x3208   :  { %3928 = vst.msk [vmem:[#allocation4] sm:$0x3] %vm3927_vm12, %v3926_v49 }
0x3209   :  { %4897 = shalt.err (!%p4894_p4)
}
0x320a   :  { %s4898_s5 = scalar_lea.hbm %s5703_s15, 32 }
0x320b   :  { %p4899_p5 = scmp.ne.s32.totalorder %s5703_s15, %s4898_s5  ;;  %p4902_p6 = scmp.lt.u32.totalorder %s4898_s5, %s5703_s15 }
0x320d   :  { %p4904_p7 = pnand %p4902_p6, %p4899_p5 }
0x320f   :  { %4907 = shalt.err (!%p4904_p7)
}
0x3210   :  { %3974 = dma.vmem_to_hbm [thread:$0]  %s3972_s7, 32, %s5703_s15, [#allocation5]   ;;  %v3962_v30 = vsel %vm3923_vm11, %v3961_v12, %v3951_v47  ;;  %v3955_v22 = vpop.permute.xlu0 %3954 }
0x3211   :  { %v3963_v52 = vsel %vm3925_vm10, %v3962_v30, %v3955_v22 }
0x3212   :  { %3964 = vst.msk [vmem:[%s5704_s16] sm:$0xff] %vm680_vm4, %v3963_v52 }
0x3213   :  { %4908 = dma.done.wait [#allocation5], 32  }
0x3214   :  { %4909 = vsyncadd [#allocation5], 4294967264 }
0x3215   :  { %3982 = vsyncpa [#allocation5], 1 }

</bundles_post_ra>
